<compile_context>
chip_gen: v7x
topology: tpu7x:2x2x1
jax: 0.10.0
libtpu: 0.0.40
codegen_flags: <defaults>
</compile_context>

<pallas_src>
import jax
import jax.numpy as jnp
from jax.experimental import pallas as pl
from jax.experimental.pallas import tpu as pltpu

H = 32            # GRU hidden size
HP = 128          # padded per-gate lane width (one full lane group)
G3 = 3 * HP       # padded concatenated-gate width, gate order [r | z | n]
FC1 = 16
FC2 = 5

# Row layout of the packed parameter block (all row offsets 8-aligned).
ROW_WHH = 0       # 128 rows: W_hh^T padded (valid rows 0:32, cols g*128 : g*128+32)
ROW_WIH = 128     # 1 row : W_ih^T padded (input_size == 1)
ROW_BI  = 136     # 1 row : [b_ir+b_hr | b_iz+b_hz | b_in] in the three segments
ROW_BHN = 144     # 1 row : b_hn in the n segment (lanes 256:288), else 0
ROW_W1  = 152     # 32 rows: fc1 W^T (32,16) at lanes 0:16
ROW_B1  = 184     # 1 row : fc1 bias at lanes 0:16
ROW_W2  = 192     # 16 rows: fc2 W^T (16,5) at lanes 0:5
ROW_B2  = 208     # 1 row : fc2 bias at lanes 0:5
PACK_ROWS = 216


def myrnn_kernel(x_ref, pack_ref, out_ref):
    """x_ref: (T, B) f32 (time-major, input_size==1 squeezed)
    pack_ref: (PACK_ROWS, G3) f32 packed parameters
    out_ref: (B, FC2) f32
    """
    T, B = x_ref.shape

    x = x_ref[...]                                        # (T, B)
    w_hh = pack_ref[ROW_WHH:ROW_WHH + HP, :]              # (128, 384), zero-padded
    w_ih = pack_ref[ROW_WIH:ROW_WIH + 1, :]               # (1, 384)
    b_i = pack_ref[ROW_BI:ROW_BI + 1, :]                  # (1, 384)
    b_hn = pack_ref[ROW_BHN:ROW_BHN + 1, 2 * HP:3 * HP]   # (1, 128)

    # Input-gate contribution for all timesteps at once (time leading).
    # Includes b_ir+b_hr, b_iz+b_hz and b_in (b_hn handled inside the loop).
    gi_all = x[:, :, None] * w_ih[None, :, :] + b_i[None, :, :]   # (T, B, 384)

    h = jnp.zeros((B, HP), jnp.float32)   # valid lanes 0:32, padding lanes stay 0

    # T is a trace-time constant -> full static unroll.
    for t in range(T):
        gi = gi_all[t]                                              # (B, 384)
        gh = jnp.dot(h, w_hh, preferred_element_type=jnp.float32)   # (B, 384)
        r = jax.nn.sigmoid(gi[:, 0:HP] + gh[:, 0:HP])
        z = jax.nn.sigmoid(gi[:, HP:2 * HP] + gh[:, HP:2 * HP])
        n = jnp.tanh(gi[:, 2 * HP:3 * HP] + r * (gh[:, 2 * HP:3 * HP] + b_hn))
        h = (1.0 - z) * n + z * h

    # Final timestep hidden state -> fc1 (no activation) -> fc2.
    hh = h[:, 0:H]                                        # (B, 32)
    w1 = pack_ref[ROW_W1:ROW_W1 + H, 0:FC1]               # (32, 16)
    b1 = pack_ref[ROW_B1:ROW_B1 + 1, 0:FC1]               # (1, 16)
    w2 = pack_ref[ROW_W2:ROW_W2 + FC1, 0:FC1]             # (16, 16), cols 5:16 zero
    b2 = pack_ref[ROW_B2:ROW_B2 + 1, 0:FC1]               # (1, 16), lanes 5:16 zero

    y1 = jnp.dot(hh, w1, preferred_element_type=jnp.float32) + b1   # (B, 16)
    y2 = jnp.dot(y1, w2, preferred_element_type=jnp.float32) + b2   # (B, 16)
    out_ref[...] = y2[:, 0:FC2]


def init_params(key):
    """PyTorch-like uniform(-1/sqrt(H), 1/sqrt(H)) init; raw (unpadded) params."""
    ks = jax.random.split(key, 10)
    k_gru = 1.0 / jnp.sqrt(jnp.float32(H))
    k_fc1 = 1.0 / jnp.sqrt(jnp.float32(H))
    k_fc2 = 1.0 / jnp.sqrt(jnp.float32(FC1))

    def u(k, shape, scale):
        return jax.random.uniform(k, shape, jnp.float32, -scale, scale)

    return {
        # GRU weights stored transposed: (in, 3H), gate order [r|z|n]
        "w_ih_t": u(ks[0], (1, 3 * H), k_gru),
        "w_hh_t": u(ks[1], (H, 3 * H), k_gru),
        "b_ih": u(ks[2], (1, 3 * H), k_gru),
        "b_hh": u(ks[3], (1, 3 * H), k_gru),
        # fc1: Linear(32 -> 16), stored transposed (32, 16)
        "w1_t": u(ks[4], (H, FC1), k_fc1),
        "b1": u(ks[5], (1, FC1), k_fc1),
        # fc2: Linear(16 -> 5), stored transposed (16, 5)
        "w2_t": u(ks[6], (FC1, FC2), k_fc2),
        "b2": u(ks[7], (1, FC2), k_fc2),
    }


def pack_params(p):
    """One-time (parameter-time) packing: pad gates to 128 lanes, fold biases,
    and concatenate everything into a single (PACK_ROWS, G3) block."""
    pack = jnp.zeros((PACK_ROWS, G3), jnp.float32)
    b_ih = p["b_ih"][0]
    b_hh = p["b_hh"][0]
    for g in range(3):
        pack = pack.at[ROW_WHH:ROW_WHH + H, g * HP:g * HP + H].set(
            p["w_hh_t"][:, g * H:(g + 1) * H])
        pack = pack.at[ROW_WIH, g * HP:g * HP + H].set(
            p["w_ih_t"][0, g * H:(g + 1) * H])
    # r / z gates: fold input + hidden biases together.
    pack = pack.at[ROW_BI, 0 * HP:0 * HP + H].set(b_ih[0:H] + b_hh[0:H])
    pack = pack.at[ROW_BI, 1 * HP:1 * HP + H].set(b_ih[H:2 * H] + b_hh[H:2 * H])
    # n gate: b_in folded into gi; b_hn kept separate (inside r*(...)).
    pack = pack.at[ROW_BI, 2 * HP:2 * HP + H].set(b_ih[2 * H:3 * H])
    pack = pack.at[ROW_BHN, 2 * HP:2 * HP + H].set(b_hh[2 * H:3 * H])
    # fc layers.
    pack = pack.at[ROW_W1:ROW_W1 + H, 0:FC1].set(p["w1_t"])
    pack = pack.at[ROW_B1, 0:FC1].set(p["b1"][0])
    pack = pack.at[ROW_W2:ROW_W2 + FC1, 0:FC2].set(p["w2_t"])
    pack = pack.at[ROW_B2, 0:FC2].set(p["b2"][0])
    return pack


@jax.jit
def myrnn_forward(x, pack):
    """x: (B, T, 1) float32, pack: (PACK_ROWS, G3) float32  ->  (B, 5) float32"""
    B, T, _ = x.shape
    x_tb = jnp.transpose(x[..., 0].astype(jnp.float32))   # (T, B), layout plumbing only

    vmem = pl.BlockSpec(memory_space=pltpu.MemorySpace.VMEM)
    return pl.pallas_call(
        myrnn_kernel,
        out_shape=jax.ShapeDtypeStruct((B, FC2), jnp.float32),
        in_specs=[vmem, vmem],
        out_specs=vmem,
    )(x_tb, pack)


def reference_forward(x, params):
    """Pure-JAX reference of the GRU + FC forward (PyTorch semantics)."""
    B, T, _ = x.shape
    h = jnp.zeros((B, H), jnp.float32)
    for t in range(T):
        x_t = x[:, t, :]                                   # (B, 1)
        gi = x_t @ params["w_ih_t"] + params["b_ih"]       # (B, 3H)
        gh = h @ params["w_hh_t"] + params["b_hh"]         # (B, 3H)
        r = jax.nn.sigmoid(gi[:, :H] + gh[:, :H])
        z = jax.nn.sigmoid(gi[:, H:2 * H] + gh[:, H:2 * H])
        n = jnp.tanh(gi[:, 2 * H:] + r * gh[:, 2 * H:])
        h = (1.0 - z) * n + z * h
    y = h @ params["w1_t"] + params["b1"]
    y = y @ params["w2_t"] + params["b2"]
    return y


if __name__ == "__main__":
    key = jax.random.PRNGKey(0)
    k_param, k_x = jax.random.split(key)

    params = init_params(k_param)
    pack = jax.block_until_ready(pack_params(params))   # one-time packing

    B, T = 2, 8
    x = jax.random.normal(k_x, (B, T, 1), jnp.float32)

    out = myrnn_forward(x, pack)
    out = jax.block_until_ready(out)

    ref = reference_forward(x, params)
    assert out.shape == (B, FC2)
    assert jnp.allclose(out, ref, atol=1e-4, rtol=1e-4), (out, ref)

    print("KERNEL_OK")
</pallas_src>

<mosaic_0001>
module attributes {stable_mosaic.version = 11 : i64} {
  func.func @myrnn_kernel(%arg0: memref<8x2xf32, #tpu.memory_space<vmem>>, %arg1: memref<216x384xf32, #tpu.memory_space<vmem>>, %arg2: memref<2x5xf32, #tpu.memory_space<vmem>>) attributes {dimension_semantics = [], scalar_prefetch = 0 : i64, scratch_operands = 0 : i64, tpu.core_type = #tpu.core_type<tc>} {
    %c0 = arith.constant 0 : index
    %c0_0 = arith.constant 0 : index
    %0 = vector.load %arg0[%c0, %c0_0] : memref<8x2xf32, #tpu.memory_space<vmem>>, vector<8x2xf32>
    %c0_1 = arith.constant 0 : index
    %c0_2 = arith.constant 0 : index
    %1 = vector.load %arg1[%c0_1, %c0_2] : memref<216x384xf32, #tpu.memory_space<vmem>>, vector<128x384xf32>
    %c128 = arith.constant 128 : index
    %c0_3 = arith.constant 0 : index
    %2 = vector.load %arg1[%c128, %c0_3] : memref<216x384xf32, #tpu.memory_space<vmem>>, vector<1x384xf32>
    %c136 = arith.constant 136 : index
    %c0_4 = arith.constant 0 : index
    %3 = vector.load %arg1[%c136, %c0_4] : memref<216x384xf32, #tpu.memory_space<vmem>>, vector<1x384xf32>
    %c144 = arith.constant 144 : index
    %c256 = arith.constant 256 : index
    %4 = vector.load %arg1[%c144, %c256] : memref<216x384xf32, #tpu.memory_space<vmem>>, vector<1x128xf32>
    %5 = vector.shape_cast %0 : vector<8x2xf32> to vector<8x2x1xf32>
    %6 = vector.shape_cast %2 : vector<1x384xf32> to vector<1x1x384xf32>
    %7 = vector.broadcast %5 : vector<8x2x1xf32> to vector<8x2x384xf32>
    %8 = vector.broadcast %6 : vector<1x1x384xf32> to vector<8x2x384xf32>
    %9 = arith.mulf %7, %8 : vector<8x2x384xf32>
    %10 = vector.shape_cast %3 : vector<1x384xf32> to vector<1x1x384xf32>
    %11 = vector.broadcast %10 : vector<1x1x384xf32> to vector<8x2x384xf32>
    %12 = arith.addf %9, %11 : vector<8x2x384xf32>
    %cst = arith.constant 0.000000e+00 : f32
    %13 = vector.broadcast %cst : f32 to vector<2x128xf32>
    %14 = vector.extract_strided_slice %12 {offsets = [0, 0, 0], sizes = [1, 2, 384], strides = [1, 1, 1]} : vector<8x2x384xf32> to vector<1x2x384xf32>
    %15 = vector.shape_cast %14 : vector<1x2x384xf32> to vector<2x384xf32>
    %cst_5 = arith.constant dense<0.000000e+00> : vector<2x384xf32>
    %16 = tpu.matmul %13, %1, %cst_5 {dimension_numbers = #tpu.dot_dimension_numbers<[1], [0], [0], [1], [0, 0, 1, 1], [], []>} : vector<2x128xf32>, vector<128x384xf32>, vector<2x384xf32> -> vector<2x384xf32>
    %17 = vector.extract_strided_slice %15 {offsets = [0, 0], sizes = [2, 128], strides = [1, 1]} : vector<2x384xf32> to vector<2x128xf32>
    %18 = vector.extract_strided_slice %16 {offsets = [0, 0], sizes = [2, 128], strides = [1, 1]} : vector<2x384xf32> to vector<2x128xf32>
    %19 = arith.addf %17, %18 : vector<2x128xf32>
    %20 = arith.negf %19 : vector<2x128xf32>
    %21 = math.exp %20 : vector<2x128xf32>
    %cst_6 = arith.constant 1.000000e+00 : f32
    %22 = vector.broadcast %cst_6 : f32 to vector<2x128xf32>
    %23 = arith.addf %22, %21 : vector<2x128xf32>
    %24 = arith.divf %22, %23 : vector<2x128xf32>
    %25 = vector.extract_strided_slice %15 {offsets = [0, 128], sizes = [2, 128], strides = [1, 1]} : vector<2x384xf32> to vector<2x128xf32>
    %26 = vector.extract_strided_slice %16 {offsets = [0, 128], sizes = [2, 128], strides = [1, 1]} : vector<2x384xf32> to vector<2x128xf32>
    %27 = arith.addf %25, %26 : vector<2x128xf32>
    %28 = arith.negf %27 : vector<2x128xf32>
    %29 = math.exp %28 : vector<2x128xf32>
    %cst_7 = arith.constant 1.000000e+00 : f32
    %30 = vector.broadcast %cst_7 : f32 to vector<2x128xf32>
    %31 = arith.addf %30, %29 : vector<2x128xf32>
    %32 = arith.divf %30, %31 : vector<2x128xf32>
    %33 = vector.extract_strided_slice %15 {offsets = [0, 256], sizes = [2, 128], strides = [1, 1]} : vector<2x384xf32> to vector<2x128xf32>
    %34 = vector.extract_strided_slice %16 {offsets = [0, 256], sizes = [2, 128], strides = [1, 1]} : vector<2x384xf32> to vector<2x128xf32>
    %35 = vector.broadcast %4 : vector<1x128xf32> to vector<2x128xf32>
    %36 = arith.addf %34, %35 : vector<2x128xf32>
    %37 = arith.mulf %24, %36 : vector<2x128xf32>
    %38 = arith.addf %33, %37 : vector<2x128xf32>
    %39 = math.tanh %38 : vector<2x128xf32>
    %cst_8 = arith.constant 1.000000e+00 : f32
    %40 = vector.broadcast %cst_8 : f32 to vector<2x128xf32>
    %41 = arith.subf %40, %32 : vector<2x128xf32>
    %42 = arith.mulf %41, %39 : vector<2x128xf32>
    %43 = arith.mulf %32, %13 : vector<2x128xf32>
    %44 = arith.addf %42, %43 : vector<2x128xf32>
    %45 = vector.extract_strided_slice %12 {offsets = [1, 0, 0], sizes = [1, 2, 384], strides = [1, 1, 1]} : vector<8x2x384xf32> to vector<1x2x384xf32>
    %46 = vector.shape_cast %45 : vector<1x2x384xf32> to vector<2x384xf32>
    %cst_9 = arith.constant dense<0.000000e+00> : vector<2x384xf32>
    %47 = tpu.matmul %44, %1, %cst_9 {dimension_numbers = #tpu.dot_dimension_numbers<[1], [0], [0], [1], [0, 0, 1, 1], [], []>} : vector<2x128xf32>, vector<128x384xf32>, vector<2x384xf32> -> vector<2x384xf32>
    %48 = vector.extract_strided_slice %46 {offsets = [0, 0], sizes = [2, 128], strides = [1, 1]} : vector<2x384xf32> to vector<2x128xf32>
    %49 = vector.extract_strided_slice %47 {offsets = [0, 0], sizes = [2, 128], strides = [1, 1]} : vector<2x384xf32> to vector<2x128xf32>
    %50 = arith.addf %48, %49 : vector<2x128xf32>
    %51 = arith.negf %50 : vector<2x128xf32>
    %52 = math.exp %51 : vector<2x128xf32>
    %cst_10 = arith.constant 1.000000e+00 : f32
    %53 = vector.broadcast %cst_10 : f32 to vector<2x128xf32>
    %54 = arith.addf %53, %52 : vector<2x128xf32>
    %55 = arith.divf %53, %54 : vector<2x128xf32>
    %56 = vector.extract_strided_slice %46 {offsets = [0, 128], sizes = [2, 128], strides = [1, 1]} : vector<2x384xf32> to vector<2x128xf32>
    %57 = vector.extract_strided_slice %47 {offsets = [0, 128], sizes = [2, 128], strides = [1, 1]} : vector<2x384xf32> to vector<2x128xf32>
    %58 = arith.addf %56, %57 : vector<2x128xf32>
    %59 = arith.negf %58 : vector<2x128xf32>
    %60 = math.exp %59 : vector<2x128xf32>
    %cst_11 = arith.constant 1.000000e+00 : f32
    %61 = vector.broadcast %cst_11 : f32 to vector<2x128xf32>
    %62 = arith.addf %61, %60 : vector<2x128xf32>
    %63 = arith.divf %61, %62 : vector<2x128xf32>
    %64 = vector.extract_strided_slice %46 {offsets = [0, 256], sizes = [2, 128], strides = [1, 1]} : vector<2x384xf32> to vector<2x128xf32>
    %65 = vector.extract_strided_slice %47 {offsets = [0, 256], sizes = [2, 128], strides = [1, 1]} : vector<2x384xf32> to vector<2x128xf32>
    %66 = vector.broadcast %4 : vector<1x128xf32> to vector<2x128xf32>
    %67 = arith.addf %65, %66 : vector<2x128xf32>
    %68 = arith.mulf %55, %67 : vector<2x128xf32>
    %69 = arith.addf %64, %68 : vector<2x128xf32>
    %70 = math.tanh %69 : vector<2x128xf32>
    %cst_12 = arith.constant 1.000000e+00 : f32
    %71 = vector.broadcast %cst_12 : f32 to vector<2x128xf32>
    %72 = arith.subf %71, %63 : vector<2x128xf32>
    %73 = arith.mulf %72, %70 : vector<2x128xf32>
    %74 = arith.mulf %63, %44 : vector<2x128xf32>
    %75 = arith.addf %73, %74 : vector<2x128xf32>
    %76 = vector.extract_strided_slice %12 {offsets = [2, 0, 0], sizes = [1, 2, 384], strides = [1, 1, 1]} : vector<8x2x384xf32> to vector<1x2x384xf32>
    %77 = vector.shape_cast %76 : vector<1x2x384xf32> to vector<2x384xf32>
    %cst_13 = arith.constant dense<0.000000e+00> : vector<2x384xf32>
    %78 = tpu.matmul %75, %1, %cst_13 {dimension_numbers = #tpu.dot_dimension_numbers<[1], [0], [0], [1], [0, 0, 1, 1], [], []>} : vector<2x128xf32>, vector<128x384xf32>, vector<2x384xf32> -> vector<2x384xf32>
    %79 = vector.extract_strided_slice %77 {offsets = [0, 0], sizes = [2, 128], strides = [1, 1]} : vector<2x384xf32> to vector<2x128xf32>
    %80 = vector.extract_strided_slice %78 {offsets = [0, 0], sizes = [2, 128], strides = [1, 1]} : vector<2x384xf32> to vector<2x128xf32>
    %81 = arith.addf %79, %80 : vector<2x128xf32>
    %82 = arith.negf %81 : vector<2x128xf32>
    %83 = math.exp %82 : vector<2x128xf32>
    %cst_14 = arith.constant 1.000000e+00 : f32
    %84 = vector.broadcast %cst_14 : f32 to vector<2x128xf32>
    %85 = arith.addf %84, %83 : vector<2x128xf32>
    %86 = arith.divf %84, %85 : vector<2x128xf32>
    %87 = vector.extract_strided_slice %77 {offsets = [0, 128], sizes = [2, 128], strides = [1, 1]} : vector<2x384xf32> to vector<2x128xf32>
    %88 = vector.extract_strided_slice %78 {offsets = [0, 128], sizes = [2, 128], strides = [1, 1]} : vector<2x384xf32> to vector<2x128xf32>
    %89 = arith.addf %87, %88 : vector<2x128xf32>
    %90 = arith.negf %89 : vector<2x128xf32>
    %91 = math.exp %90 : vector<2x128xf32>
    %cst_15 = arith.constant 1.000000e+00 : f32
    %92 = vector.broadcast %cst_15 : f32 to vector<2x128xf32>
    %93 = arith.addf %92, %91 : vector<2x128xf32>
    %94 = arith.divf %92, %93 : vector<2x128xf32>
    %95 = vector.extract_strided_slice %77 {offsets = [0, 256], sizes = [2, 128], strides = [1, 1]} : vector<2x384xf32> to vector<2x128xf32>
    %96 = vector.extract_strided_slice %78 {offsets = [0, 256], sizes = [2, 128], strides = [1, 1]} : vector<2x384xf32> to vector<2x128xf32>
    %97 = vector.broadcast %4 : vector<1x128xf32> to vector<2x128xf32>
    %98 = arith.addf %96, %97 : vector<2x128xf32>
    %99 = arith.mulf %86, %98 : vector<2x128xf32>
    %100 = arith.addf %95, %99 : vector<2x128xf32>
    %101 = math.tanh %100 : vector<2x128xf32>
    %cst_16 = arith.constant 1.000000e+00 : f32
    %102 = vector.broadcast %cst_16 : f32 to vector<2x128xf32>
    %103 = arith.subf %102, %94 : vector<2x128xf32>
    %104 = arith.mulf %103, %101 : vector<2x128xf32>
    %105 = arith.mulf %94, %75 : vector<2x128xf32>
    %106 = arith.addf %104, %105 : vector<2x128xf32>
    %107 = vector.extract_strided_slice %12 {offsets = [3, 0, 0], sizes = [1, 2, 384], strides = [1, 1, 1]} : vector<8x2x384xf32> to vector<1x2x384xf32>
    %108 = vector.shape_cast %107 : vector<1x2x384xf32> to vector<2x384xf32>
    %cst_17 = arith.constant dense<0.000000e+00> : vector<2x384xf32>
    %109 = tpu.matmul %106, %1, %cst_17 {dimension_numbers = #tpu.dot_dimension_numbers<[1], [0], [0], [1], [0, 0, 1, 1], [], []>} : vector<2x128xf32>, vector<128x384xf32>, vector<2x384xf32> -> vector<2x384xf32>
    %110 = vector.extract_strided_slice %108 {offsets = [0, 0], sizes = [2, 128], strides = [1, 1]} : vector<2x384xf32> to vector<2x128xf32>
    %111 = vector.extract_strided_slice %109 {offsets = [0, 0], sizes = [2, 128], strides = [1, 1]} : vector<2x384xf32> to vector<2x128xf32>
    %112 = arith.addf %110, %111 : vector<2x128xf32>
    %113 = arith.negf %112 : vector<2x128xf32>
    %114 = math.exp %113 : vector<2x128xf32>
    %cst_18 = arith.constant 1.000000e+00 : f32
    %115 = vector.broadcast %cst_18 : f32 to vector<2x128xf32>
    %116 = arith.addf %115, %114 : vector<2x128xf32>
    %117 = arith.divf %115, %116 : vector<2x128xf32>
    %118 = vector.extract_strided_slice %108 {offsets = [0, 128], sizes = [2, 128], strides = [1, 1]} : vector<2x384xf32> to vector<2x128xf32>
    %119 = vector.extract_strided_slice %109 {offsets = [0, 128], sizes = [2, 128], strides = [1, 1]} : vector<2x384xf32> to vector<2x128xf32>
    %120 = arith.addf %118, %119 : vector<2x128xf32>
    %121 = arith.negf %120 : vector<2x128xf32>
    %122 = math.exp %121 : vector<2x128xf32>
    %cst_19 = arith.constant 1.000000e+00 : f32
    %123 = vector.broadcast %cst_19 : f32 to vector<2x128xf32>
    %124 = arith.addf %123, %122 : vector<2x128xf32>
    %125 = arith.divf %123, %124 : vector<2x128xf32>
    %126 = vector.extract_strided_slice %108 {offsets = [0, 256], sizes = [2, 128], strides = [1, 1]} : vector<2x384xf32> to vector<2x128xf32>
    %127 = vector.extract_strided_slice %109 {offsets = [0, 256], sizes = [2, 128], strides = [1, 1]} : vector<2x384xf32> to vector<2x128xf32>
    %128 = vector.broadcast %4 : vector<1x128xf32> to vector<2x128xf32>
    %129 = arith.addf %127, %128 : vector<2x128xf32>
    %130 = arith.mulf %117, %129 : vector<2x128xf32>
    %131 = arith.addf %126, %130 : vector<2x128xf32>
    %132 = math.tanh %131 : vector<2x128xf32>
    %cst_20 = arith.constant 1.000000e+00 : f32
    %133 = vector.broadcast %cst_20 : f32 to vector<2x128xf32>
    %134 = arith.subf %133, %125 : vector<2x128xf32>
    %135 = arith.mulf %134, %132 : vector<2x128xf32>
    %136 = arith.mulf %125, %106 : vector<2x128xf32>
    %137 = arith.addf %135, %136 : vector<2x128xf32>
    %138 = vector.extract_strided_slice %12 {offsets = [4, 0, 0], sizes = [1, 2, 384], strides = [1, 1, 1]} : vector<8x2x384xf32> to vector<1x2x384xf32>
    %139 = vector.shape_cast %138 : vector<1x2x384xf32> to vector<2x384xf32>
    %cst_21 = arith.constant dense<0.000000e+00> : vector<2x384xf32>
    %140 = tpu.matmul %137, %1, %cst_21 {dimension_numbers = #tpu.dot_dimension_numbers<[1], [0], [0], [1], [0, 0, 1, 1], [], []>} : vector<2x128xf32>, vector<128x384xf32>, vector<2x384xf32> -> vector<2x384xf32>
    %141 = vector.extract_strided_slice %139 {offsets = [0, 0], sizes = [2, 128], strides = [1, 1]} : vector<2x384xf32> to vector<2x128xf32>
    %142 = vector.extract_strided_slice %140 {offsets = [0, 0], sizes = [2, 128], strides = [1, 1]} : vector<2x384xf32> to vector<2x128xf32>
    %143 = arith.addf %141, %142 : vector<2x128xf32>
    %144 = arith.negf %143 : vector<2x128xf32>
    %145 = math.exp %144 : vector<2x128xf32>
    %cst_22 = arith.constant 1.000000e+00 : f32
    %146 = vector.broadcast %cst_22 : f32 to vector<2x128xf32>
    %147 = arith.addf %146, %145 : vector<2x128xf32>
    %148 = arith.divf %146, %147 : vector<2x128xf32>
    %149 = vector.extract_strided_slice %139 {offsets = [0, 128], sizes = [2, 128], strides = [1, 1]} : vector<2x384xf32> to vector<2x128xf32>
    %150 = vector.extract_strided_slice %140 {offsets = [0, 128], sizes = [2, 128], strides = [1, 1]} : vector<2x384xf32> to vector<2x128xf32>
    %151 = arith.addf %149, %150 : vector<2x128xf32>
    %152 = arith.negf %151 : vector<2x128xf32>
    %153 = math.exp %152 : vector<2x128xf32>
    %cst_23 = arith.constant 1.000000e+00 : f32
    %154 = vector.broadcast %cst_23 : f32 to vector<2x128xf32>
    %155 = arith.addf %154, %153 : vector<2x128xf32>
    %156 = arith.divf %154, %155 : vector<2x128xf32>
    %157 = vector.extract_strided_slice %139 {offsets = [0, 256], sizes = [2, 128], strides = [1, 1]} : vector<2x384xf32> to vector<2x128xf32>
    %158 = vector.extract_strided_slice %140 {offsets = [0, 256], sizes = [2, 128], strides = [1, 1]} : vector<2x384xf32> to vector<2x128xf32>
    %159 = vector.broadcast %4 : vector<1x128xf32> to vector<2x128xf32>
    %160 = arith.addf %158, %159 : vector<2x128xf32>
    %161 = arith.mulf %148, %160 : vector<2x128xf32>
    %162 = arith.addf %157, %161 : vector<2x128xf32>
    %163 = math.tanh %162 : vector<2x128xf32>
    %cst_24 = arith.constant 1.000000e+00 : f32
    %164 = vector.broadcast %cst_24 : f32 to vector<2x128xf32>
    %165 = arith.subf %164, %156 : vector<2x128xf32>
    %166 = arith.mulf %165, %163 : vector<2x128xf32>
    %167 = arith.mulf %156, %137 : vector<2x128xf32>
    %168 = arith.addf %166, %167 : vector<2x128xf32>
    %169 = vector.extract_strided_slice %12 {offsets = [5, 0, 0], sizes = [1, 2, 384], strides = [1, 1, 1]} : vector<8x2x384xf32> to vector<1x2x384xf32>
    %170 = vector.shape_cast %169 : vector<1x2x384xf32> to vector<2x384xf32>
    %cst_25 = arith.constant dense<0.000000e+00> : vector<2x384xf32>
    %171 = tpu.matmul %168, %1, %cst_25 {dimension_numbers = #tpu.dot_dimension_numbers<[1], [0], [0], [1], [0, 0, 1, 1], [], []>} : vector<2x128xf32>, vector<128x384xf32>, vector<2x384xf32> -> vector<2x384xf32>
    %172 = vector.extract_strided_slice %170 {offsets = [0, 0], sizes = [2, 128], strides = [1, 1]} : vector<2x384xf32> to vector<2x128xf32>
    %173 = vector.extract_strided_slice %171 {offsets = [0, 0], sizes = [2, 128], strides = [1, 1]} : vector<2x384xf32> to vector<2x128xf32>
    %174 = arith.addf %172, %173 : vector<2x128xf32>
    %175 = arith.negf %174 : vector<2x128xf32>
    %176 = math.exp %175 : vector<2x128xf32>
    %cst_26 = arith.constant 1.000000e+00 : f32
    %177 = vector.broadcast %cst_26 : f32 to vector<2x128xf32>
    %178 = arith.addf %177, %176 : vector<2x128xf32>
    %179 = arith.divf %177, %178 : vector<2x128xf32>
    %180 = vector.extract_strided_slice %170 {offsets = [0, 128], sizes = [2, 128], strides = [1, 1]} : vector<2x384xf32> to vector<2x128xf32>
    %181 = vector.extract_strided_slice %171 {offsets = [0, 128], sizes = [2, 128], strides = [1, 1]} : vector<2x384xf32> to vector<2x128xf32>
    %182 = arith.addf %180, %181 : vector<2x128xf32>
    %183 = arith.negf %182 : vector<2x128xf32>
    %184 = math.exp %183 : vector<2x128xf32>
    %cst_27 = arith.constant 1.000000e+00 : f32
    %185 = vector.broadcast %cst_27 : f32 to vector<2x128xf32>
    %186 = arith.addf %185, %184 : vector<2x128xf32>
    %187 = arith.divf %185, %186 : vector<2x128xf32>
    %188 = vector.extract_strided_slice %170 {offsets = [0, 256], sizes = [2, 128], strides = [1, 1]} : vector<2x384xf32> to vector<2x128xf32>
    %189 = vector.extract_strided_slice %171 {offsets = [0, 256], sizes = [2, 128], strides = [1, 1]} : vector<2x384xf32> to vector<2x128xf32>
    %190 = vector.broadcast %4 : vector<1x128xf32> to vector<2x128xf32>
    %191 = arith.addf %189, %190 : vector<2x128xf32>
    %192 = arith.mulf %179, %191 : vector<2x128xf32>
    %193 = arith.addf %188, %192 : vector<2x128xf32>
    %194 = math.tanh %193 : vector<2x128xf32>
    %cst_28 = arith.constant 1.000000e+00 : f32
    %195 = vector.broadcast %cst_28 : f32 to vector<2x128xf32>
    %196 = arith.subf %195, %187 : vector<2x128xf32>
    %197 = arith.mulf %196, %194 : vector<2x128xf32>
    %198 = arith.mulf %187, %168 : vector<2x128xf32>
    %199 = arith.addf %197, %198 : vector<2x128xf32>
    %200 = vector.extract_strided_slice %12 {offsets = [6, 0, 0], sizes = [1, 2, 384], strides = [1, 1, 1]} : vector<8x2x384xf32> to vector<1x2x384xf32>
    %201 = vector.shape_cast %200 : vector<1x2x384xf32> to vector<2x384xf32>
    %cst_29 = arith.constant dense<0.000000e+00> : vector<2x384xf32>
    %202 = tpu.matmul %199, %1, %cst_29 {dimension_numbers = #tpu.dot_dimension_numbers<[1], [0], [0], [1], [0, 0, 1, 1], [], []>} : vector<2x128xf32>, vector<128x384xf32>, vector<2x384xf32> -> vector<2x384xf32>
    %203 = vector.extract_strided_slice %201 {offsets = [0, 0], sizes = [2, 128], strides = [1, 1]} : vector<2x384xf32> to vector<2x128xf32>
    %204 = vector.extract_strided_slice %202 {offsets = [0, 0], sizes = [2, 128], strides = [1, 1]} : vector<2x384xf32> to vector<2x128xf32>
    %205 = arith.addf %203, %204 : vector<2x128xf32>
    %206 = arith.negf %205 : vector<2x128xf32>
    %207 = math.exp %206 : vector<2x128xf32>
    %cst_30 = arith.constant 1.000000e+00 : f32
    %208 = vector.broadcast %cst_30 : f32 to vector<2x128xf32>
    %209 = arith.addf %208, %207 : vector<2x128xf32>
    %210 = arith.divf %208, %209 : vector<2x128xf32>
    %211 = vector.extract_strided_slice %201 {offsets = [0, 128], sizes = [2, 128], strides = [1, 1]} : vector<2x384xf32> to vector<2x128xf32>
    %212 = vector.extract_strided_slice %202 {offsets = [0, 128], sizes = [2, 128], strides = [1, 1]} : vector<2x384xf32> to vector<2x128xf32>
    %213 = arith.addf %211, %212 : vector<2x128xf32>
    %214 = arith.negf %213 : vector<2x128xf32>
    %215 = math.exp %214 : vector<2x128xf32>
    %cst_31 = arith.constant 1.000000e+00 : f32
    %216 = vector.broadcast %cst_31 : f32 to vector<2x128xf32>
    %217 = arith.addf %216, %215 : vector<2x128xf32>
    %218 = arith.divf %216, %217 : vector<2x128xf32>
    %219 = vector.extract_strided_slice %201 {offsets = [0, 256], sizes = [2, 128], strides = [1, 1]} : vector<2x384xf32> to vector<2x128xf32>
    %220 = vector.extract_strided_slice %202 {offsets = [0, 256], sizes = [2, 128], strides = [1, 1]} : vector<2x384xf32> to vector<2x128xf32>
    %221 = vector.broadcast %4 : vector<1x128xf32> to vector<2x128xf32>
    %222 = arith.addf %220, %221 : vector<2x128xf32>
    %223 = arith.mulf %210, %222 : vector<2x128xf32>
    %224 = arith.addf %219, %223 : vector<2x128xf32>
    %225 = math.tanh %224 : vector<2x128xf32>
    %cst_32 = arith.constant 1.000000e+00 : f32
    %226 = vector.broadcast %cst_32 : f32 to vector<2x128xf32>
    %227 = arith.subf %226, %218 : vector<2x128xf32>
    %228 = arith.mulf %227, %225 : vector<2x128xf32>
    %229 = arith.mulf %218, %199 : vector<2x128xf32>
    %230 = arith.addf %228, %229 : vector<2x128xf32>
    %231 = vector.extract_strided_slice %12 {offsets = [7, 0, 0], sizes = [1, 2, 384], strides = [1, 1, 1]} : vector<8x2x384xf32> to vector<1x2x384xf32>
    %232 = vector.shape_cast %231 : vector<1x2x384xf32> to vector<2x384xf32>
    %cst_33 = arith.constant dense<0.000000e+00> : vector<2x384xf32>
    %233 = tpu.matmul %230, %1, %cst_33 {dimension_numbers = #tpu.dot_dimension_numbers<[1], [0], [0], [1], [0, 0, 1, 1], [], []>} : vector<2x128xf32>, vector<128x384xf32>, vector<2x384xf32> -> vector<2x384xf32>
    %234 = vector.extract_strided_slice %232 {offsets = [0, 0], sizes = [2, 128], strides = [1, 1]} : vector<2x384xf32> to vector<2x128xf32>
    %235 = vector.extract_strided_slice %233 {offsets = [0, 0], sizes = [2, 128], strides = [1, 1]} : vector<2x384xf32> to vector<2x128xf32>
    %236 = arith.addf %234, %235 : vector<2x128xf32>
    %237 = arith.negf %236 : vector<2x128xf32>
    %238 = math.exp %237 : vector<2x128xf32>
    %cst_34 = arith.constant 1.000000e+00 : f32
    %239 = vector.broadcast %cst_34 : f32 to vector<2x128xf32>
    %240 = arith.addf %239, %238 : vector<2x128xf32>
    %241 = arith.divf %239, %240 : vector<2x128xf32>
    %242 = vector.extract_strided_slice %232 {offsets = [0, 128], sizes = [2, 128], strides = [1, 1]} : vector<2x384xf32> to vector<2x128xf32>
    %243 = vector.extract_strided_slice %233 {offsets = [0, 128], sizes = [2, 128], strides = [1, 1]} : vector<2x384xf32> to vector<2x128xf32>
    %244 = arith.addf %242, %243 : vector<2x128xf32>
    %245 = arith.negf %244 : vector<2x128xf32>
    %246 = math.exp %245 : vector<2x128xf32>
    %cst_35 = arith.constant 1.000000e+00 : f32
    %247 = vector.broadcast %cst_35 : f32 to vector<2x128xf32>
    %248 = arith.addf %247, %246 : vector<2x128xf32>
    %249 = arith.divf %247, %248 : vector<2x128xf32>
    %250 = vector.extract_strided_slice %232 {offsets = [0, 256], sizes = [2, 128], strides = [1, 1]} : vector<2x384xf32> to vector<2x128xf32>
    %251 = vector.extract_strided_slice %233 {offsets = [0, 256], sizes = [2, 128], strides = [1, 1]} : vector<2x384xf32> to vector<2x128xf32>
    %252 = vector.broadcast %4 : vector<1x128xf32> to vector<2x128xf32>
    %253 = arith.addf %251, %252 : vector<2x128xf32>
    %254 = arith.mulf %241, %253 : vector<2x128xf32>
    %255 = arith.addf %250, %254 : vector<2x128xf32>
    %256 = math.tanh %255 : vector<2x128xf32>
    %cst_36 = arith.constant 1.000000e+00 : f32
    %257 = vector.broadcast %cst_36 : f32 to vector<2x128xf32>
    %258 = arith.subf %257, %249 : vector<2x128xf32>
    %259 = arith.mulf %258, %256 : vector<2x128xf32>
    %260 = arith.mulf %249, %230 : vector<2x128xf32>
    %261 = arith.addf %259, %260 : vector<2x128xf32>
    %262 = vector.extract_strided_slice %261 {offsets = [0, 0], sizes = [2, 32], strides = [1, 1]} : vector<2x128xf32> to vector<2x32xf32>
    %c152 = arith.constant 152 : index
    %c0_37 = arith.constant 0 : index
    %263 = vector.load %arg1[%c152, %c0_37] : memref<216x384xf32, #tpu.memory_space<vmem>>, vector<32x16xf32>
    %c184 = arith.constant 184 : index
    %c0_38 = arith.constant 0 : index
    %264 = vector.load %arg1[%c184, %c0_38] : memref<216x384xf32, #tpu.memory_space<vmem>>, vector<1x16xf32>
    %c192 = arith.constant 192 : index
    %c0_39 = arith.constant 0 : index
    %265 = vector.load %arg1[%c192, %c0_39] : memref<216x384xf32, #tpu.memory_space<vmem>>, vector<16x16xf32>
    %c208 = arith.constant 208 : index
    %c0_40 = arith.constant 0 : index
    %266 = vector.load %arg1[%c208, %c0_40] : memref<216x384xf32, #tpu.memory_space<vmem>>, vector<1x16xf32>
    %cst_41 = arith.constant dense<0.000000e+00> : vector<2x16xf32>
    %267 = tpu.matmul %262, %263, %cst_41 {dimension_numbers = #tpu.dot_dimension_numbers<[1], [0], [0], [1], [0, 0, 1, 1], [], []>} : vector<2x32xf32>, vector<32x16xf32>, vector<2x16xf32> -> vector<2x16xf32>
    %268 = vector.broadcast %264 : vector<1x16xf32> to vector<2x16xf32>
    %269 = arith.addf %267, %268 : vector<2x16xf32>
    %cst_42 = arith.constant dense<0.000000e+00> : vector<2x16xf32>
    %270 = tpu.matmul %269, %265, %cst_42 {dimension_numbers = #tpu.dot_dimension_numbers<[1], [0], [0], [1], [0, 0, 1, 1], [], []>} : vector<2x16xf32>, vector<16x16xf32>, vector<2x16xf32> -> vector<2x16xf32>
    %271 = vector.broadcast %266 : vector<1x16xf32> to vector<2x16xf32>
    %272 = arith.addf %270, %271 : vector<2x16xf32>
    %273 = vector.extract_strided_slice %272 {offsets = [0, 0], sizes = [2, 5], strides = [1, 1]} : vector<2x16xf32> to vector<2x5xf32>
    %c0_43 = arith.constant 0 : index
    %c0_44 = arith.constant 0 : index
    %274 = vector.load %arg2[%c0_43, %c0_44] : memref<2x5xf32, #tpu.memory_space<vmem>>, vector<2x5xf32>
    tpu.vector_store %arg2[%c0_43, %c0_44], %273 {strides = array<i32>} : memref<2x5xf32, #tpu.memory_space<vmem>>, vector<2x5xf32>,
    return
  }
}

</mosaic_0001>

<bundles_post_ra>
// kernel: myrnn_forward.1
= control target key start
LH: loop header
LB: loop body
LE: loop exit
PB: predicated region body
PF: predicated region fallthrough
CT: control target
= control target key end

     0   :  { %7 = vsyncpa [#allocation3], 0  ;;  %s3259_s0 = inlined_call_operand.vmem [shape: f32[8,2], index: 0, kind: input, shape index: {}]   ;;  %s3260_s1 = inlined_call_operand.hbm [shape: f32[216,384], index: 1, kind: input, shape index: {}]   ;;  %s3261_s2 = inlined_call_operand.hbm [shape: f32[2,5], index: 2, kind: output, shape index: {}]  }
   0x1   :  { %8 = vsyncpa [#allocation4], 0  ;;  %s2746_s9 = smov [#allocation2]   ;;  %s2698_s13 = scalar_lea.hbm %s3260_s1, 10368 }
   0x2   :  { %s16_s10 = sshll.u32 %s2746_s9, 4  ;;  %p2699_p0 = scmp.ne.s32.totalorder %s3260_s1, %s2698_s13  ;;  %s17_s10 = int_to_ptr.vmem [resolvable:$true] %s16_s10 }
   0x3   :  { %p2702_p1 = scmp.lt.u32.totalorder %s2698_s13, %s3260_s1 }
   0x5   :  { %p2704_p2 = pnand %p2702_p1, %p2699_p0 }
   0x7   :  { %2707 = shalt.err (!%p2704_p2)
}
   0x8   :  { %s2708_s18 = scalar_lea.vmem %s17_s10, 10368  ;;  %p2713_p4 = scmp.lt.s32.totalorder %s17_s10, %s17_s10 }
   0x9   :  { %p2709_p3 = scmp.ne.s32.totalorder %s17_s10, %s2708_s18  ;;  %p2714_p5 = scmp.lt.s32.totalorder %s2708_s18, %s2708_s18 }
   0xb   :  { %p2715_p6 = por %p2714_p5, %p2713_p4 }
   0xd   :  { %p2716_p7 = pnand %p2715_p6, %p2709_p3 }
   0xf   :  { %2719 = shalt.err (!%p2716_p7)
}
  0x10   :  { %s2747_s19 = smov 384   ;;  %s2748_s20 = smov 24  }
  0x11   :  { %22 = dma.hbm_to_vmem [thread:$0]  %s3260_s1, 10368, %s17_s10, [#allocation3], %s2747_s19, %s2747_s19, %s2748_s20  }
  0x12   :  { %2742 = dma.done.wait [#allocation3], 10368  }
  0x13   :  { %2743 = vsyncadd [#allocation3], 4294956928  ;;  %v2749_v0 = vmov 0.0|0.0   ;;  %v2750_v1 = vmov 0.0   ;;  %vm2751_vm0 = vmmov 0   ;;  %v28_v2 = vld [vmem:[#allocation2 + $0x8] sm:$0xff]  ;;  %v80_v19 = vlaneseq }
  0x14   :  { %2185 = vmatprep.subr.bf16.mxu1 %v2749_v0  ;;  %280 = vmatprep.mubr.f32.mxu0 %v2750_v1  ;;  %v31_v3 = vld [vmem:[#allocation2 + $0x20] sm:$0xff]  ;;  %v30_v6 = vld [vmem:[#allocation2 + $0x18] sm:$0xff]  ;;  %v37_v8 = vld [vmem:[#allocation2 + $0x50] sm:$0xff]  ;;  %vm1528_vm1 = vcmask 261120   ;;  %vm1602_vm2 = vcmask 130048   ;;  %vm1676_vm3 = vcmask 33792  }
  0x15   :  { %1887 = vmatprep.mubr.msk.f32.mxu1 %vm2751_vm0, %v2750_v1  ;;  %v27_v4 = vld [vmem:[#allocation2] sm:$0xff]  ;;  %v2784_v5 = vpack.c.bf16 %v31_v3, %v28_v2  ;;  %v34_v7 = vld [vmem:[#allocation2 + $0x38] sm:$0xff]  ;;  %v33_v11 = vld [vmem:[#allocation2 + $0x30] sm:$0xff]  ;;  %v2803_v28 = vshrl.u32 %v80_v19, 7 }
  0x16   :  { %v2786_v9 = vpack.c.bf16 %v30_v6, %v27_v4  ;;  %v2788_v10 = vpack.c.bf16 %v37_v8, %v34_v7  ;;  %v36_v12 = vld [vmem:[#allocation2 + $0x48] sm:$0xff]  ;;  %v43_v14 = vld [vmem:[#allocation2 + $0x80] sm:$0xff]  ;;  %v42_v18 = vld [vmem:[#allocation2 + $0x78] sm:$0xff] }
  0x17   :  { %v40_v13 = vld [vmem:[#allocation2 + $0x68] sm:$0xff]  ;;  %2154 = vmatprep.subr.bf16.mxu0 %v2784_v5  ;;  %v2792_v15 = vpack.c.bf16 %v36_v12, %v33_v11  ;;  %v39_v17 = vld [vmem:[#allocation2 + $0x60] sm:$0xff]  ;;  %v46_v20 = vld [vmem:[#allocation2 + $0x98] sm:$0xff]  ;;  %v2818_v41 = vsub.s32 0, %v2803_v28 }
  0x18   :  { %2156 = vmatpush1.bf16.msra.mxu0 %v2786_v9  ;;  %v2795_v16 = vpack.c.bf16 %v43_v14, %v40_v13  ;;  %v49_v21 = vld [vmem:[#allocation2 + $0xb0] sm:$0xff]  ;;  %v2798_v22 = vpack.c.bf16 %v42_v18, %v39_v17  ;;  %v48_v25 = vld [vmem:[#allocation2 + $0xa8] sm:$0xff]  ;;  %v55_v30 = vld [vmem:[#allocation2 + $0xe0] sm:$0xff] }
  0x19   :  { %2158 = vmatprep.subr.bf16.mxu0 %v2788_v10  ;;  %v45_v23 = vld [vmem:[#allocation2 + $0x90] sm:$0xff]  ;;  %v2801_v24 = vpack.c.bf16 %v49_v21, %v46_v20  ;;  %v32_v27 = vld [vmem:[#allocation2 + $0x28] sm:$0xff]  ;;  %v35_v32 = vld [vmem:[#allocation2 + $0x40] sm:$0xff] }
  0x1a   :  { %v29_v26 = vld [vmem:[#allocation2 + $0x10] sm:$0xff]  ;;  %v52_v29 = vld [vmem:[#allocation2 + $0xc8] sm:$0xff]  ;;  %v38_v33 = vld [vmem:[#allocation2 + $0x58] sm:$0xff]  ;;  %v2808_v34 = vpack.c.bf16 %v48_v25, %v45_v23  ;;  %v89_v23 = vsub.s32 1, %v2803_v28 }
  0x1b   :  { %v2805_v31 = vpack.c.bf16 %v32_v27, %v29_v26  ;;  %v51_v35 = vld [vmem:[#allocation2 + $0xc0] sm:$0xff]  ;;  %v2811_v36 = vpack.c.bf16 %v38_v33, %v35_v32  ;;  %v2814_v37 = vpack.c.bf16 %v55_v30, %v52_v29  ;;  %v54_v38 = vld [vmem:[#allocation2 + $0xd8] sm:$0xff]  ;;  %v41_v39 = vld [vmem:[#allocation2 + $0x70] sm:$0xff] }
  0x1c   :  { %2160 = vmatpush1.bf16.msra.mxu0 %v2792_v15  ;;  %v44_v40 = vld [vmem:[#allocation2 + $0x88] sm:$0xff]  ;;  %v58_v42 = vld [vmem:[#allocation2 + $0xf8] sm:$0xff]  ;;  %v61_v43 = vld [vmem:[#allocation2 + $0x110] sm:$0xff]  ;;  %v2821_v44 = vpack.c.bf16 %v54_v38, %v51_v35 }
  0x1d   :  { %2162 = vmatprep.subr.bf16.mxu0 %v2795_v16  ;;  %2187 = vmatpush3.bf16.msra.mxu1 %v2805_v31  ;;  %v57_v45 = vld [vmem:[#allocation2 + $0xf0] sm:$0xff]  ;;  %v2824_v46 = vpack.c.bf16 %v44_v40, %v41_v39  ;;  %v2829_v47 = vld [vmem:[%s3259_s0] sm:$0xff]  ;;  %v2832_v48 = vpack.c.bf16 %v61_v43, %v58_v42  ;;  %v60_v49 = vld [vmem:[#allocation2 + $0x108] sm:$0xff] }
  0x1e   :  { %2188 = vmatprep.subr.bf16.mxu1 %v2749_v0  ;;  %v47_v50 = vld [vmem:[#allocation2 + $0xa0] sm:$0xff]  ;;  %v50_v51 = vld [vmem:[#allocation2 + $0xb8] sm:$0xff]  ;;  %v83_v52 = vrot.slane %v2829_v47, %v2818_v41  ;;  %v64_v53 = vld [vmem:[#allocation2 + $0x128] sm:$0xff]  ;;  %v2838_v55 = vpack.c.bf16 %v60_v49, %v57_v45  ;;  %v90_v25 = vrot.slane %v2829_v47, %v89_v23 }
  0x1f   :  { %v67_v54 = vld [vmem:[#allocation2 + $0x140] sm:$0xff]  ;;  %v2841_v57 = vpack.c.bf16 %v50_v51, %v47_v50  ;;  %v66_v59 = vld [vmem:[#allocation2 + $0x138] sm:$0xff]  ;;  %v53_v60 = vld [vmem:[#allocation2 + $0xd0] sm:$0xff] }
  0x20   :  { %2164 = vmatpush1.bf16.msra.mxu0 %v2798_v22  ;;  %85 = vbcast.lane.b32.xlu0 %v83_v52, 256  ;;  %v63_v56 = vld [vmem:[#allocation2 + $0x120] sm:$0xff]  ;;  %v2844_v58 = vpack.c.bf16 %v67_v54, %v64_v53  ;;  %v56_v61 = vld [vmem:[#allocation2 + $0xe8] sm:$0xff]  ;;  %v70_v62 = vld [vmem:[#allocation2 + $0x158] sm:$0xff] }
  0x21   :  { %2166 = vmatprep.subr.bf16.mxu0 %v2801_v24  ;;  %2190 = vmatpush3.bf16.msra.mxu1 %v2811_v36  ;;  %v73_v63 = vld [vmem:[#allocation2 + $0x170] sm:$0xff]  ;;  %v2848_v2 = vpack.c.bf16 %v66_v59, %v63_v56  ;;  %v2851_v4 = vpack.c.bf16 %v56_v61, %v53_v60  ;;  %v72_v7 = vld [vmem:[#allocation2 + $0x168] sm:$0xff]  ;;  %v59_v8 = vld [vmem:[#allocation2 + $0x100] sm:$0xff]  ;;  %v96_v59 = vsub.s32 2, %v2803_v28 }
  0x22   :  { %2191 = vmatprep.subr.bf16.mxu1 %v2749_v0  ;;  %v69_v3 = vld [vmem:[#allocation2 + $0x150] sm:$0xff]  ;;  %v2854_v6 = vpack.c.bf16 %v73_v63, %v70_v62  ;;  %v62_v11 = vld [vmem:[#allocation2 + $0x118] sm:$0xff]  ;;  %v68_v17 = vld [vmem:[#allocation2 + $0x148] sm:$0xff] }
  0x23   :  { %v2858_v12 = vpack.c.bf16 %v72_v7, %v69_v3  ;;  %v2861_v13 = vpack.c.bf16 %v62_v11, %v59_v8  ;;  %v65_v14 = vld [vmem:[#allocation2 + $0x130] sm:$0xff]  ;;  %v71_v19 = vld [vmem:[#allocation2 + $0x160] sm:$0xff]  ;;  %v74_v20 = vld [vmem:[#allocation2 + $0x178] sm:$0xff] }
  0x24   :  { %2168 = vmatpush1.bf16.msra.mxu0 %v2808_v34  ;;  %v2867_v18 = vpack.c.bf16 %v68_v17, %v65_v14  ;;  %v2873_v21 = vpack.c.bf16 %v74_v20, %v71_v19  ;;  %92 = vbcast.lane.b32.xlu0 %v90_v25, 256  ;;  %v76_v26 = vld [vmem:[#allocation2 + $0x180] ss:$8 sm:$0x7] }
  0x25   :  { %2170 = vmatprep.subr.bf16.mxu0 %v2814_v37  ;;  %2193 = vmatpush3.bf16.msra.mxu1 %v2824_v46  ;;  %v2917_v27 = vrot.slane %v76_v26, %v2818_v41  ;;  %v78_v29 = vld [vmem:[#allocation2 + $0x198] ss:$8 sm:$0x7]  ;;  %v2919_v32 = vrot.slane %v76_v26, %v89_v23  ;;  %v2931_v60 = vrot.slane %v76_v26, %v96_v59 }
  0x26   :  { %2194 = vmatprep.subr.bf16.mxu1 %v2749_v0  ;;  %v2922_v33 = vrot.slane %v78_v29, %v2818_v41  ;;  %v2925_v38 = vrot.slane %v78_v29, %v89_v23  ;;  %v2933_v62 = vld [vmem:[#allocation2 + $0x1c0] ss:$0 sm:$0xff]  ;;  %v2935_v63 = vrot.slane %v78_v29, %v96_v59  ;;  %v97_v29 = vrot.slane %v2829_v47, %v96_v59 }
  0x28   :  { %2172 = vmatpush1.bf16.msra.mxu0 %v2821_v44  ;;  %99 = vbcast.lane.b32.xlu1 %v97_v29, 256 }
  0x29   :  { %2174 = vmatprep.subr.bf16.mxu0 %v2832_v48  ;;  %2196 = vmatpush3.bf16.msra.mxu1 %v2841_v57 }
  0x2a   :  { %2197 = vmatprep.subr.bf16.mxu1 %v2749_v0 }
  0x2c   :  { %2176 = vmatpush1.bf16.msra.mxu0 %v2838_v55 }
  0x2d   :  { %2178 = vmatprep.subr.bf16.mxu0 %v2844_v58  ;;  %2199 = vmatpush3.bf16.msra.mxu1 %v2851_v4 }
  0x2e   :  { %2200 = vmatprep.subr.bf16.mxu1 %v2749_v0 }
  0x30   :  { %2180 = vmatpush1.bf16.msra.mxu0 %v2848_v2 }
  0x31   :  { %2182 = vmatprep.subr.bf16.mxu0 %v2854_v6  ;;  %2202 = vmatpush3.bf16.msra.mxu1 %v2861_v13 }
  0x32   :  { %2203 = vmatprep.subr.bf16.mxu1 %v2749_v0 }
  0x34   :  { %2184 = vmatpush1.bf16.msra.mxu0 %v2858_v12 }
  0x35   :  { %2210 = vmatprep.subr.bf16.mxu0 %v2784_v5  ;;  %2205 = vmatpush3.bf16.msra.mxu1 %v2867_v18 }
  0x36   :  { %2206 = vmatprep.subr.bf16.mxu1 %v2749_v0 }
  0x37   :  { %281 = vmatmul.mubr.f32.vlgmr.msra.gmra.mrb[0].mxu0 %v2750_v1 }
  0x38   :  { %2212 = vmatpush1.bf16.msra.mxu0 %v2786_v9  ;;  %443 = vmatprep.mubr.f32.mxu0 %v2750_v1 }
  0x39   :  { %2214 = vmatprep.subr.bf16.mxu0 %v2788_v10  ;;  %2208 = vmatpush3.bf16.msra.mxu1 %v2873_v21 }
  0x3a   :  { %2241 = vmatprep.subr.bf16.mxu1 %v2749_v0 }
  0x3c   :  { %2216 = vmatpush1.bf16.msra.mxu0 %v2792_v15  ;;  %1888 = vmatmul.mubr.f32.vlgmr.msra.gmra.mrb[0].mxu1 %v2750_v1 }
  0x3d   :  { %2218 = vmatprep.subr.bf16.mxu0 %v2795_v16  ;;  %2243 = vmatpush3.bf16.msra.mxu1 %v2805_v31 }
  0x3e   :  { %2244 = vmatprep.subr.bf16.mxu1 %v2749_v0  ;;  %1922 = vmatprep.mubr.msk.f32.mxu1 %vm2751_vm0, %v2750_v1 }
  0x40   :  { %2220 = vmatpush1.bf16.msra.mxu0 %v2798_v22 }
  0x41   :  { %2222 = vmatprep.subr.bf16.mxu0 %v2801_v24  ;;  %2246 = vmatpush3.bf16.msra.mxu1 %v2811_v36 }
  0x42   :  { %2247 = vmatprep.subr.bf16.mxu1 %v2749_v0 }
  0x44   :  { %2224 = vmatpush1.bf16.msra.mxu0 %v2808_v34 }
  0x45   :  { %2226 = vmatprep.subr.bf16.mxu0 %v2814_v37  ;;  %2249 = vmatpush3.bf16.msra.mxu1 %v2824_v46 }
  0x46   :  { %2250 = vmatprep.subr.bf16.mxu1 %v2749_v0 }
  0x48   :  { %2228 = vmatpush1.bf16.msra.mxu0 %v2821_v44 }
  0x49   :  { %2230 = vmatprep.subr.bf16.mxu0 %v2832_v48  ;;  %2252 = vmatpush3.bf16.msra.mxu1 %v2841_v57 }
  0x4a   :  { %2253 = vmatprep.subr.bf16.mxu1 %v2749_v0 }
  0x4c   :  { %2232 = vmatpush1.bf16.msra.mxu0 %v2838_v55 }
  0x4d   :  { %2234 = vmatprep.subr.bf16.mxu0 %v2844_v58  ;;  %2255 = vmatpush3.bf16.msra.mxu1 %v2851_v4 }
  0x4e   :  { %2256 = vmatprep.subr.bf16.mxu1 %v2749_v0 }
  0x50   :  { %2236 = vmatpush1.bf16.msra.mxu0 %v2848_v2 }
  0x51   :  { %2238 = vmatprep.subr.bf16.mxu0 %v2854_v6  ;;  %2258 = vmatpush3.bf16.msra.mxu1 %v2861_v13 }
  0x52   :  { %2259 = vmatprep.subr.bf16.mxu1 %v2749_v0 }
  0x54   :  { %2240 = vmatpush1.bf16.msra.mxu0 %v2858_v12 }
  0x55   :  { %2266 = vmatprep.subr.bf16.mxu0 %v2784_v5  ;;  %2261 = vmatpush3.bf16.msra.mxu1 %v2867_v18 }
  0x56   :  { %2262 = vmatprep.subr.bf16.mxu1 %v2749_v0 }
  0x59   :  { %2264 = vmatpush3.bf16.msra.mxu1 %v2873_v21 }
  0x5a   :  { %2297 = vmatprep.subr.bf16.mxu1 %v2749_v0 }
  0x92   :  { %v86_v30 = vpop.permute.xlu0 %85 }
  0x93   :  { %v152_v35 = vmul.f32 %v2917_v27, %v86_v30  ;;  %v153_v39 = vmul.f32 %v2919_v32, %v86_v30  ;;  %v154_v3 = vmul.f32 %v2931_v60, %v86_v30 }
  0x95   :  { %v192_v40 = vadd.f32 %v2922_v33, %v152_v35  ;;  %v193_v43 = vadd.f32 %v2925_v38, %v153_v39  ;;  %v194_v14 = vadd.f32 %v2935_v63, %v154_v3 }
  0x96   :  { %v93_v30 = vpop.permute.xlu0 %92 }
 0x10a   :  { %v282_v42 = vpop.f32.mrb[0].mxu0 }
 0x10b   :  { %v357_v45 = vadd.f32 %v282_v42, %v192_v40  ;;  %v284_v49 = vpop.f32.mrb[1].mxu0  ;;  %v155_v40 = vmul.f32 %v2917_v27, %v93_v30  ;;  %v156_v42 = vmul.f32 %v2919_v32, %v93_v30 }
 0x10c   :  { %v364_v51 = vadd.f32 %v284_v49, %v193_v43 }
 0x10d   :  { %v1693_v50 = vmul.f32 -1.442695, %v357_v45  ;;  %v195_v43 = vadd.f32 %v2922_v33, %v155_v40 }
 0x10e   :  { %v1694_v52 = vmul.f32 -1.442695, %v364_v51 }
 0x10f   :  { %2617 = vpow2.f32 %v1693_v50  ;;  %v353_v53 = vpop.f32.mrb[0].mxu1  ;;  %v196_v50 = vadd.f32 %v2925_v38, %v156_v42  ;;  %v100_v42 = vpop.permute.xlu1 %99 }
 0x110   :  { %v1889_v41 = vpop.f32.mrb[1].mxu1  ;;  %2619 = vpow2.f32 %v1694_v52  ;;  %v371_v8 = vadd.f32 %v353_v53, %v2933_v62 }
 0x119   :  { %v2618_v54 = vpop.eup %2617 }
 0x11a   :  { %v361_v56 = vadd.f32 1.0, %v2618_v54  ;;  %v2620_v61 = vpop.eup %2619 }
 0x11b   :  { %v368_v7 = vadd.f32 1.0, %v2620_v61 }
 0x11c   :  { %2621 = vrcp.f32 %v361_v56 }
 0x11d   :  { %2623 = vrcp.f32 %v368_v7  ;;  %v157_v7 = vmul.f32 %v2931_v60, %v93_v30 }
 0x126   :  { %v2622_v11 = vpop.eup %2621 }
 0x127   :  { %v372_v17 = vmul.f32 %v2622_v11, %v371_v8  ;;  %v2624_v20 = vpop.eup %2623 }
 0x128   :  { %v375_v23 = vsub.f32 1.0, %v2624_v20  ;;  %v377_v35 = vmul.f32 0.0, %v2624_v20 }
 0x129   :  { %v373_v19 = vadd.f32 %v372_v17, %v194_v14  ;;  %v197_v17 = vadd.f32 %v2935_v63, %v157_v7 }
 0x12b   :  { %2625 = vtanh.f32 %v373_v19 }
 0x135   :  { %v2626_v25 = vpop.eup %2625 }
 0x136   :  { %v376_v26 = vmul.f32 %v2626_v25, %v375_v23 }
 0x138   :  { %v2940_v39 = vadd.f32 %v377_v35, %v376_v26 }
 0x13a   :  { %444 = vmatmul.mubr.f32.vlgmr.msra.gmra.mrb[2].mxu0 %v2940_v39  ;;  %1923 = vmatmul.mubr.f32.vlgmr.msra.gmra.mrb[2].mxu1 %v2940_v39 }
 0x13b   :  { %2268 = vmatpush1.bf16.msra.mxu0 %v2786_v9  ;;  %2299 = vmatpush3.bf16.msra.mxu1 %v2805_v31 }
 0x13c   :  { %2270 = vmatprep.subr.bf16.mxu0 %v2788_v10  ;;  %2300 = vmatprep.subr.bf16.mxu1 %v2749_v0 }
 0x13d   :  { %606 = vmatprep.mubr.f32.mxu0 %v2750_v1  ;;  %1957 = vmatprep.mubr.msk.f32.mxu1 %vm2751_vm0, %v2750_v1 }
 0x13f   :  { %2272 = vmatpush1.bf16.msra.mxu0 %v2792_v15  ;;  %2302 = vmatpush3.bf16.msra.mxu1 %v2811_v36 }
 0x140   :  { %2274 = vmatprep.subr.bf16.mxu0 %v2795_v16  ;;  %2303 = vmatprep.subr.bf16.mxu1 %v2749_v0 }
 0x143   :  { %2276 = vmatpush1.bf16.msra.mxu0 %v2798_v22  ;;  %2305 = vmatpush3.bf16.msra.mxu1 %v2824_v46 }
 0x144   :  { %2278 = vmatprep.subr.bf16.mxu0 %v2801_v24  ;;  %2306 = vmatprep.subr.bf16.mxu1 %v2749_v0 }
 0x147   :  { %2280 = vmatpush1.bf16.msra.mxu0 %v2808_v34  ;;  %2308 = vmatpush3.bf16.msra.mxu1 %v2841_v57 }
 0x148   :  { %2282 = vmatprep.subr.bf16.mxu0 %v2814_v37  ;;  %2309 = vmatprep.subr.bf16.mxu1 %v2749_v0 }
 0x14b   :  { %2284 = vmatpush1.bf16.msra.mxu0 %v2821_v44  ;;  %2311 = vmatpush3.bf16.msra.mxu1 %v2851_v4 }
 0x14c   :  { %2286 = vmatprep.subr.bf16.mxu0 %v2832_v48  ;;  %2312 = vmatprep.subr.bf16.mxu1 %v2749_v0 }
 0x14f   :  { %2288 = vmatpush1.bf16.msra.mxu0 %v2838_v55  ;;  %2314 = vmatpush3.bf16.msra.mxu1 %v2861_v13 }
 0x150   :  { %2290 = vmatprep.subr.bf16.mxu0 %v2844_v58  ;;  %2315 = vmatprep.subr.bf16.mxu1 %v2749_v0 }
 0x153   :  { %2292 = vmatpush1.bf16.msra.mxu0 %v2848_v2  ;;  %2317 = vmatpush3.bf16.msra.mxu1 %v2867_v18 }
 0x154   :  { %2294 = vmatprep.subr.bf16.mxu0 %v2854_v6  ;;  %2318 = vmatprep.subr.bf16.mxu1 %v2749_v0 }
 0x157   :  { %2296 = vmatpush1.bf16.msra.mxu0 %v2858_v12  ;;  %2320 = vmatpush3.bf16.msra.mxu1 %v2873_v21 }
 0x158   :  { %2322 = vmatprep.subr.bf16.mxu0 %v2784_v5  ;;  %2353 = vmatprep.subr.bf16.mxu1 %v2749_v0 }
 0x20d   :  { %v445_v45 = vpop.f32.mrb[2].mxu0  ;;  %v516_v49 = vpop.f32.mrb[2].mxu1 }
 0x20e   :  { %v520_v51 = vadd.f32 %v445_v45, %v195_v43  ;;  %v447_v52 = vpop.f32.mrb[3].mxu0  ;;  %v1924_v53 = vpop.f32.mrb[3].mxu1  ;;  %v534_v11 = vadd.f32 %v516_v49, %v2933_v62  ;;  %v158_v43 = vmul.f32 %v2917_v27, %v100_v42  ;;  %v159_v45 = vmul.f32 %v2919_v32, %v100_v42 }
 0x20f   :  { %v527_v54 = vadd.f32 %v447_v52, %v196_v50 }
 0x210   :  { %v1695_v41 = vmul.f32 -1.442695, %v520_v51  ;;  %v198_v49 = vadd.f32 %v2922_v33, %v158_v43  ;;  %v199_v52 = vadd.f32 %v2925_v38, %v159_v45 }
 0x211   :  { %v1696_v56 = vmul.f32 -1.442695, %v527_v54 }
 0x212   :  { %2627 = vpow2.f32 %v1695_v41 }
 0x213   :  { %2629 = vpow2.f32 %v1696_v56 }
 0x21c   :  { %v2628_v59 = vpop.eup %2627 }
 0x21d   :  { %v524_v61 = vadd.f32 1.0, %v2628_v59  ;;  %v2630_v3 = vpop.eup %2629 }
 0x21e   :  { %v531_v8 = vadd.f32 1.0, %v2630_v3 }
 0x21f   :  { %2631 = vrcp.f32 %v524_v61 }
 0x220   :  { %2633 = vrcp.f32 %v531_v8 }
 0x229   :  { %v2632_v14 = vpop.eup %2631 }
 0x22a   :  { %v535_v19 = vmul.f32 %v2632_v14, %v534_v11  ;;  %v2634_v23 = vpop.eup %2633  ;;  %v160_v11 = vmul.f32 %v2931_v60, %v100_v42 }
 0x22b   :  { %v538_v25 = vsub.f32 1.0, %v2634_v23  ;;  %v540_v29 = vmul.f32 %v2634_v23, %v2940_v39  ;;  %v103_v39 = vsub.s32 3, %v2803_v28 }
 0x22c   :  { %v536_v20 = vadd.f32 %v535_v19, %v197_v17 }
 0x22d   :  { %v104_v30 = vrot.slane %v2829_v47, %v103_v39 }
 0x22e   :  { %2635 = vtanh.f32 %v536_v20  ;;  %v200_v20 = vadd.f32 %v2935_v63, %v160_v11 }
 0x22f   :  { %106 = vbcast.lane.b32.xlu1 %v104_v30, 256 }
 0x238   :  { %v2636_v26 = vpop.eup %2635 }
 0x239   :  { %v539_v35 = vmul.f32 %v2636_v26, %v538_v25 }
 0x23b   :  { %v2988_v40 = vadd.f32 %v540_v29, %v539_v35 }
 0x23d   :  { %607 = vmatmul.mubr.f32.vlgmr.msra.gmra.mrb[4].mxu0 %v2988_v40  ;;  %1958 = vmatmul.mubr.f32.vlgmr.msra.gmra.mrb[4].mxu1 %v2988_v40 }
 0x23e   :  { %2324 = vmatpush1.bf16.msra.mxu0 %v2786_v9  ;;  %2355 = vmatpush3.bf16.msra.mxu1 %v2805_v31 }
 0x23f   :  { %2326 = vmatprep.subr.bf16.mxu0 %v2788_v10  ;;  %2356 = vmatprep.subr.bf16.mxu1 %v2749_v0 }
 0x240   :  { %769 = vmatprep.mubr.f32.mxu0 %v2750_v1  ;;  %1992 = vmatprep.mubr.msk.f32.mxu1 %vm2751_vm0, %v2750_v1 }
 0x242   :  { %2328 = vmatpush1.bf16.msra.mxu0 %v2792_v15  ;;  %2358 = vmatpush3.bf16.msra.mxu1 %v2811_v36 }
 0x243   :  { %2330 = vmatprep.subr.bf16.mxu0 %v2795_v16  ;;  %2359 = vmatprep.subr.bf16.mxu1 %v2749_v0 }
 0x246   :  { %2332 = vmatpush1.bf16.msra.mxu0 %v2798_v22  ;;  %2361 = vmatpush3.bf16.msra.mxu1 %v2824_v46 }
 0x247   :  { %2334 = vmatprep.subr.bf16.mxu0 %v2801_v24  ;;  %2362 = vmatprep.subr.bf16.mxu1 %v2749_v0 }
 0x24a   :  { %2336 = vmatpush1.bf16.msra.mxu0 %v2808_v34  ;;  %2364 = vmatpush3.bf16.msra.mxu1 %v2841_v57 }
 0x24b   :  { %2338 = vmatprep.subr.bf16.mxu0 %v2814_v37  ;;  %2365 = vmatprep.subr.bf16.mxu1 %v2749_v0 }
 0x24e   :  { %2340 = vmatpush1.bf16.msra.mxu0 %v2821_v44  ;;  %2367 = vmatpush3.bf16.msra.mxu1 %v2851_v4 }
 0x24f   :  { %2342 = vmatprep.subr.bf16.mxu0 %v2832_v48  ;;  %2368 = vmatprep.subr.bf16.mxu1 %v2749_v0 }
 0x252   :  { %2344 = vmatpush1.bf16.msra.mxu0 %v2838_v55  ;;  %2370 = vmatpush3.bf16.msra.mxu1 %v2861_v13 }
 0x253   :  { %2346 = vmatprep.subr.bf16.mxu0 %v2844_v58  ;;  %2371 = vmatprep.subr.bf16.mxu1 %v2749_v0 }
 0x256   :  { %2348 = vmatpush1.bf16.msra.mxu0 %v2848_v2  ;;  %2373 = vmatpush3.bf16.msra.mxu1 %v2867_v18 }
 0x257   :  { %2350 = vmatprep.subr.bf16.mxu0 %v2854_v6  ;;  %2374 = vmatprep.subr.bf16.mxu1 %v2749_v0 }
 0x25a   :  { %2352 = vmatpush1.bf16.msra.mxu0 %v2858_v12  ;;  %2376 = vmatpush3.bf16.msra.mxu1 %v2873_v21 }
 0x25b   :  { %2378 = vmatprep.subr.bf16.mxu0 %v2784_v5  ;;  %2409 = vmatprep.subr.bf16.mxu1 %v2749_v0 }
 0x2a1   :  { %v107_v45 = vpop.permute.xlu1 %106 }
 0x310   :  { %v608_v50 = vpop.f32.mrb[4].mxu0  ;;  %v679_v51 = vpop.f32.mrb[4].mxu1 }
 0x311   :  { %v683_v53 = vadd.f32 %v608_v50, %v198_v49  ;;  %v610_v41 = vpop.f32.mrb[5].mxu0  ;;  %v1959_v54 = vpop.f32.mrb[5].mxu1  ;;  %v697_v17 = vadd.f32 %v679_v51, %v2933_v62  ;;  %v161_v49 = vmul.f32 %v2917_v27, %v107_v45  ;;  %v162_v50 = vmul.f32 %v2919_v32, %v107_v45 }
 0x312   :  { %v690_v59 = vadd.f32 %v610_v41, %v199_v52 }
 0x313   :  { %v1697_v56 = vmul.f32 -1.442695, %v683_v53  ;;  %v201_v51 = vadd.f32 %v2922_v33, %v161_v49  ;;  %v202_v41 = vadd.f32 %v2925_v38, %v162_v50 }
 0x314   :  { %v1698_v61 = vmul.f32 -1.442695, %v690_v59 }
 0x315   :  { %2637 = vpow2.f32 %v1697_v56 }
 0x316   :  { %2639 = vpow2.f32 %v1698_v61 }
 0x31f   :  { %v2638_v3 = vpop.eup %2637 }
 0x320   :  { %v687_v7 = vadd.f32 1.0, %v2638_v3  ;;  %v2640_v8 = vpop.eup %2639 }
 0x321   :  { %v694_v14 = vadd.f32 1.0, %v2640_v8 }
 0x322   :  { %2641 = vrcp.f32 %v687_v7 }
 0x323   :  { %2643 = vrcp.f32 %v694_v14 }
 0x32c   :  { %v2642_v19 = vpop.eup %2641 }
 0x32d   :  { %v698_v23 = vmul.f32 %v2642_v19, %v697_v17  ;;  %v2644_v26 = vpop.eup %2643  ;;  %v163_v17 = vmul.f32 %v2931_v60, %v107_v45 }
 0x32e   :  { %v701_v35 = vsub.f32 1.0, %v2644_v26  ;;  %v703_v30 = vmul.f32 %v2644_v26, %v2988_v40  ;;  %v110_v40 = vsub.s32 4, %v2803_v28 }
 0x32f   :  { %v699_v25 = vadd.f32 %v698_v23, %v200_v20 }
 0x330   :  { %v111_v42 = vrot.slane %v2829_v47, %v110_v40 }
 0x331   :  { %2645 = vtanh.f32 %v699_v25  ;;  %v203_v25 = vadd.f32 %v2935_v63, %v163_v17 }
 0x332   :  { %113 = vbcast.lane.b32.xlu0 %v111_v42, 256 }
 0x33b   :  { %v2646_v29 = vpop.eup %2645 }
 0x33c   :  { %v702_v39 = vmul.f32 %v2646_v29, %v701_v35 }
 0x33e   :  { %v3037_v43 = vadd.f32 %v703_v30, %v702_v39 }
 0x340   :  { %770 = vmatmul.mubr.f32.vlgmr.msra.gmra.mrb[6].mxu0 %v3037_v43  ;;  %1993 = vmatmul.mubr.f32.vlgmr.msra.gmra.mrb[6].mxu1 %v3037_v43 }
 0x341   :  { %2380 = vmatpush1.bf16.msra.mxu0 %v2786_v9  ;;  %2411 = vmatpush3.bf16.msra.mxu1 %v2805_v31 }
 0x342   :  { %2382 = vmatprep.subr.bf16.mxu0 %v2788_v10  ;;  %2412 = vmatprep.subr.bf16.mxu1 %v2749_v0 }
 0x343   :  { %932 = vmatprep.mubr.f32.mxu0 %v2750_v1  ;;  %2027 = vmatprep.mubr.msk.f32.mxu1 %vm2751_vm0, %v2750_v1 }
 0x345   :  { %2384 = vmatpush1.bf16.msra.mxu0 %v2792_v15  ;;  %2414 = vmatpush3.bf16.msra.mxu1 %v2811_v36 }
 0x346   :  { %2386 = vmatprep.subr.bf16.mxu0 %v2795_v16  ;;  %2415 = vmatprep.subr.bf16.mxu1 %v2749_v0 }
 0x349   :  { %2388 = vmatpush1.bf16.msra.mxu0 %v2798_v22  ;;  %2417 = vmatpush3.bf16.msra.mxu1 %v2824_v46 }
 0x34a   :  { %2390 = vmatprep.subr.bf16.mxu0 %v2801_v24  ;;  %2418 = vmatprep.subr.bf16.mxu1 %v2749_v0 }
 0x34d   :  { %2392 = vmatpush1.bf16.msra.mxu0 %v2808_v34  ;;  %2420 = vmatpush3.bf16.msra.mxu1 %v2841_v57 }
 0x34e   :  { %2394 = vmatprep.subr.bf16.mxu0 %v2814_v37  ;;  %2421 = vmatprep.subr.bf16.mxu1 %v2749_v0 }
 0x351   :  { %2396 = vmatpush1.bf16.msra.mxu0 %v2821_v44  ;;  %2423 = vmatpush3.bf16.msra.mxu1 %v2851_v4 }
 0x352   :  { %2398 = vmatprep.subr.bf16.mxu0 %v2832_v48  ;;  %2424 = vmatprep.subr.bf16.mxu1 %v2749_v0 }
 0x355   :  { %2400 = vmatpush1.bf16.msra.mxu0 %v2838_v55  ;;  %2426 = vmatpush3.bf16.msra.mxu1 %v2861_v13 }
 0x356   :  { %2402 = vmatprep.subr.bf16.mxu0 %v2844_v58  ;;  %2427 = vmatprep.subr.bf16.mxu1 %v2749_v0 }
 0x359   :  { %2404 = vmatpush1.bf16.msra.mxu0 %v2848_v2  ;;  %2429 = vmatpush3.bf16.msra.mxu1 %v2867_v18 }
 0x35a   :  { %2406 = vmatprep.subr.bf16.mxu0 %v2854_v6  ;;  %2430 = vmatprep.subr.bf16.mxu1 %v2749_v0 }
 0x35d   :  { %2408 = vmatpush1.bf16.msra.mxu0 %v2858_v12  ;;  %2432 = vmatpush3.bf16.msra.mxu1 %v2873_v21 }
 0x35e   :  { %2434 = vmatprep.subr.bf16.mxu0 %v2784_v5  ;;  %2465 = vmatprep.subr.bf16.mxu1 %v2749_v0 }
 0x3a4   :  { %v114_v50 = vpop.permute.xlu0 %113 }
 0x413   :  { %v771_v52 = vpop.f32.mrb[6].mxu0  ;;  %v842_v53 = vpop.f32.mrb[6].mxu1 }
 0x414   :  { %v846_v54 = vadd.f32 %v771_v52, %v201_v51  ;;  %v773_v56 = vpop.f32.mrb[7].mxu0  ;;  %v1994_v59 = vpop.f32.mrb[7].mxu1  ;;  %v860_v20 = vadd.f32 %v842_v53, %v2933_v62  ;;  %v164_v51 = vmul.f32 %v2917_v27, %v114_v50  ;;  %v165_v52 = vmul.f32 %v2919_v32, %v114_v50 }
 0x415   :  { %v853_v3 = vadd.f32 %v773_v56, %v202_v41 }
 0x416   :  { %v1699_v61 = vmul.f32 -1.442695, %v846_v54  ;;  %v204_v53 = vadd.f32 %v2922_v33, %v164_v51  ;;  %v205_v56 = vadd.f32 %v2925_v38, %v165_v52 }
 0x417   :  { %v1700_v7 = vmul.f32 -1.442695, %v853_v3 }
 0x418   :  { %2647 = vpow2.f32 %v1699_v61 }
 0x419   :  { %2649 = vpow2.f32 %v1700_v7 }
 0x422   :  { %v2648_v8 = vpop.eup %2647 }
 0x423   :  { %v850_v11 = vadd.f32 1.0, %v2648_v8  ;;  %v2650_v14 = vpop.eup %2649 }
 0x424   :  { %v857_v19 = vadd.f32 1.0, %v2650_v14 }
 0x425   :  { %2651 = vrcp.f32 %v850_v11 }
 0x426   :  { %2653 = vrcp.f32 %v857_v19 }
 0x42f   :  { %v2652_v23 = vpop.eup %2651 }
 0x430   :  { %v861_v26 = vmul.f32 %v2652_v23, %v860_v20  ;;  %v2654_v29 = vpop.eup %2653  ;;  %v166_v20 = vmul.f32 %v2931_v60, %v114_v50 }
 0x431   :  { %v864_v39 = vsub.f32 1.0, %v2654_v29  ;;  %v866_v42 = vmul.f32 %v2654_v29, %v3037_v43  ;;  %v117_v43 = vsub.s32 5, %v2803_v28 }
 0x432   :  { %v862_v35 = vadd.f32 %v861_v26, %v203_v25 }
 0x433   :  { %v118_v45 = vrot.slane %v2829_v47, %v117_v43 }
 0x434   :  { %2655 = vtanh.f32 %v862_v35  ;;  %v206_v35 = vadd.f32 %v2935_v63, %v166_v20 }
 0x435   :  { %120 = vbcast.lane.b32.xlu1 %v118_v45, 256 }
 0x43e   :  { %v2656_v30 = vpop.eup %2655 }
 0x43f   :  { %v865_v40 = vmul.f32 %v2656_v30, %v864_v39 }
 0x441   :  { %v3086_v49 = vadd.f32 %v866_v42, %v865_v40 }
 0x443   :  { %933 = vmatmul.mubr.f32.vlgmr.msra.gmra.mrb[8].mxu0 %v3086_v49  ;;  %2028 = vmatmul.mubr.f32.vlgmr.msra.gmra.mrb[8].mxu1 %v3086_v49 }
 0x444   :  { %2436 = vmatpush1.bf16.msra.mxu0 %v2786_v9  ;;  %2467 = vmatpush3.bf16.msra.mxu1 %v2805_v31 }
 0x445   :  { %2438 = vmatprep.subr.bf16.mxu0 %v2788_v10  ;;  %2468 = vmatprep.subr.bf16.mxu1 %v2749_v0 }
 0x446   :  { %1095 = vmatprep.mubr.f32.mxu0 %v2750_v1  ;;  %2062 = vmatprep.mubr.msk.f32.mxu1 %vm2751_vm0, %v2750_v1 }
 0x448   :  { %2440 = vmatpush1.bf16.msra.mxu0 %v2792_v15  ;;  %2470 = vmatpush3.bf16.msra.mxu1 %v2811_v36 }
 0x449   :  { %2442 = vmatprep.subr.bf16.mxu0 %v2795_v16  ;;  %2471 = vmatprep.subr.bf16.mxu1 %v2749_v0 }
 0x44c   :  { %2444 = vmatpush1.bf16.msra.mxu0 %v2798_v22  ;;  %2473 = vmatpush3.bf16.msra.mxu1 %v2824_v46 }
 0x44d   :  { %2446 = vmatprep.subr.bf16.mxu0 %v2801_v24  ;;  %2474 = vmatprep.subr.bf16.mxu1 %v2749_v0 }
 0x450   :  { %2448 = vmatpush1.bf16.msra.mxu0 %v2808_v34  ;;  %2476 = vmatpush3.bf16.msra.mxu1 %v2841_v57 }
 0x451   :  { %2450 = vmatprep.subr.bf16.mxu0 %v2814_v37  ;;  %2477 = vmatprep.subr.bf16.mxu1 %v2749_v0 }
 0x454   :  { %2452 = vmatpush1.bf16.msra.mxu0 %v2821_v44  ;;  %2479 = vmatpush3.bf16.msra.mxu1 %v2851_v4 }
 0x455   :  { %2454 = vmatprep.subr.bf16.mxu0 %v2832_v48  ;;  %2480 = vmatprep.subr.bf16.mxu1 %v2749_v0 }
 0x458   :  { %2456 = vmatpush1.bf16.msra.mxu0 %v2838_v55  ;;  %2482 = vmatpush3.bf16.msra.mxu1 %v2861_v13 }
 0x459   :  { %2458 = vmatprep.subr.bf16.mxu0 %v2844_v58  ;;  %2483 = vmatprep.subr.bf16.mxu1 %v2749_v0 }
 0x45c   :  { %2460 = vmatpush1.bf16.msra.mxu0 %v2848_v2  ;;  %2485 = vmatpush3.bf16.msra.mxu1 %v2867_v18 }
 0x45d   :  { %2462 = vmatprep.subr.bf16.mxu0 %v2854_v6  ;;  %2486 = vmatprep.subr.bf16.mxu1 %v2749_v0 }
 0x460   :  { %2464 = vmatpush1.bf16.msra.mxu0 %v2858_v12  ;;  %2488 = vmatpush3.bf16.msra.mxu1 %v2873_v21 }
 0x461   :  { %2490 = vmatprep.subr.bf16.mxu0 %v2784_v5  ;;  %2521 = vmatprep.subr.bf16.mxu1 %v2749_v0 }
 0x4a7   :  { %v121_v52 = vpop.permute.xlu1 %120 }
 0x4a8   :  { %v169_v20 = vmul.f32 %v2931_v60, %v121_v52 }
 0x516   :  { %v934_v41 = vpop.f32.mrb[8].mxu0  ;;  %v1005_v54 = vpop.f32.mrb[8].mxu1 }
 0x517   :  { %v1009_v59 = vadd.f32 %v934_v41, %v204_v53  ;;  %v936_v61 = vpop.f32.mrb[9].mxu0  ;;  %v2029_v3 = vpop.f32.mrb[9].mxu1  ;;  %v1023_v25 = vadd.f32 %v1005_v54, %v2933_v62  ;;  %v167_v53 = vmul.f32 %v2917_v27, %v121_v52  ;;  %v168_v41 = vmul.f32 %v2919_v32, %v121_v52 }
 0x518   :  { %v1016_v8 = vadd.f32 %v936_v61, %v205_v56 }
 0x519   :  { %v1701_v7 = vmul.f32 -1.442695, %v1009_v59  ;;  %v207_v54 = vadd.f32 %v2922_v33, %v167_v53  ;;  %v208_v61 = vadd.f32 %v2925_v38, %v168_v41 }
 0x51a   :  { %v1702_v11 = vmul.f32 -1.442695, %v1016_v8 }
 0x51b   :  { %2657 = vpow2.f32 %v1701_v7 }
 0x51c   :  { %2659 = vpow2.f32 %v1702_v11 }
 0x525   :  { %v2658_v14 = vpop.eup %2657 }
 0x526   :  { %v1013_v17 = vadd.f32 1.0, %v2658_v14  ;;  %v2660_v19 = vpop.eup %2659 }
 0x527   :  { %v1020_v23 = vadd.f32 1.0, %v2660_v19 }
 0x528   :  { %2661 = vrcp.f32 %v1013_v17 }
 0x529   :  { %2663 = vrcp.f32 %v1020_v23 }
 0x532   :  { %v2662_v26 = vpop.eup %2661 }
 0x533   :  { %v1024_v29 = vmul.f32 %v2662_v26, %v1023_v25  ;;  %v2664_v30 = vpop.eup %2663 }
 0x534   :  { %v1027_v40 = vsub.f32 1.0, %v2664_v30  ;;  %v1029_v45 = vmul.f32 %v2664_v30, %v3086_v49  ;;  %v124_v49 = vsub.s32 6, %v2803_v28 }
 0x535   :  { %v1025_v39 = vadd.f32 %v1024_v29, %v206_v35  ;;  %v209_v35 = vadd.f32 %v2935_v63, %v169_v20 }
 0x536   :  { %v125_v50 = vrot.slane %v2829_v47, %v124_v49 }
 0x537   :  { %2665 = vtanh.f32 %v1025_v39 }
 0x538   :  { %127 = vbcast.lane.b32.xlu0 %v125_v50, 256 }
 0x541   :  { %v2666_v42 = vpop.eup %2665 }
 0x542   :  { %v1028_v43 = vmul.f32 %v2666_v42, %v1027_v40 }
 0x544   :  { %v3135_v51 = vadd.f32 %v1029_v45, %v1028_v43 }
 0x546   :  { %1096 = vmatmul.mubr.f32.vlgmr.msra.gmra.mrb[10].mxu0 %v3135_v51  ;;  %2063 = vmatmul.mubr.f32.vlgmr.msra.gmra.mrb[10].mxu1 %v3135_v51 }
 0x547   :  { %2492 = vmatpush1.bf16.msra.mxu0 %v2786_v9  ;;  %2523 = vmatpush3.bf16.msra.mxu1 %v2805_v31 }
 0x548   :  { %2494 = vmatprep.subr.bf16.mxu0 %v2788_v10  ;;  %2524 = vmatprep.subr.bf16.mxu1 %v2749_v0 }
 0x549   :  { %1258 = vmatprep.mubr.f32.mxu0 %v2750_v1  ;;  %2097 = vmatprep.mubr.msk.f32.mxu1 %vm2751_vm0, %v2750_v1 }
 0x54b   :  { %2496 = vmatpush1.bf16.msra.mxu0 %v2792_v15  ;;  %2526 = vmatpush3.bf16.msra.mxu1 %v2811_v36 }
 0x54c   :  { %2498 = vmatprep.subr.bf16.mxu0 %v2795_v16  ;;  %2527 = vmatprep.subr.bf16.mxu1 %v2749_v0 }
 0x54f   :  { %2500 = vmatpush1.bf16.msra.mxu0 %v2798_v22  ;;  %2529 = vmatpush3.bf16.msra.mxu1 %v2824_v46 }
 0x550   :  { %2502 = vmatprep.subr.bf16.mxu0 %v2801_v24  ;;  %2530 = vmatprep.subr.bf16.mxu1 %v2749_v0 }
 0x553   :  { %2504 = vmatpush1.bf16.msra.mxu0 %v2808_v34  ;;  %2532 = vmatpush3.bf16.msra.mxu1 %v2841_v57 }
 0x554   :  { %2506 = vmatprep.subr.bf16.mxu0 %v2814_v37  ;;  %2533 = vmatprep.subr.bf16.mxu1 %v2749_v0 }
 0x557   :  { %2508 = vmatpush1.bf16.msra.mxu0 %v2821_v44  ;;  %2535 = vmatpush3.bf16.msra.mxu1 %v2851_v4 }
 0x558   :  { %2510 = vmatprep.subr.bf16.mxu0 %v2832_v48  ;;  %2536 = vmatprep.subr.bf16.mxu1 %v2749_v0 }
 0x55b   :  { %2512 = vmatpush1.bf16.msra.mxu0 %v2838_v55  ;;  %2538 = vmatpush3.bf16.msra.mxu1 %v2861_v13 }
 0x55c   :  { %2514 = vmatprep.subr.bf16.mxu0 %v2844_v58  ;;  %2539 = vmatprep.subr.bf16.mxu1 %v2749_v0 }
 0x55f   :  { %2516 = vmatpush1.bf16.msra.mxu0 %v2848_v2  ;;  %2541 = vmatpush3.bf16.msra.mxu1 %v2867_v18 }
 0x560   :  { %2518 = vmatprep.subr.bf16.mxu0 %v2854_v6  ;;  %2542 = vmatprep.subr.bf16.mxu1 %v2749_v0 }
 0x563   :  { %2520 = vmatpush1.bf16.msra.mxu0 %v2858_v12  ;;  %2544 = vmatpush3.bf16.msra.mxu1 %v2873_v21 }
 0x564   :  { %2546 = vmatprep.subr.bf16.mxu0 %v2784_v5  ;;  %2577 = vmatprep.subr.bf16.mxu1 %v2749_v0 }
 0x619   :  { %v1097_v56 = vpop.f32.mrb[10].mxu0  ;;  %v1168_v59 = vpop.f32.mrb[10].mxu1 }
 0x61a   :  { %v1172_v3 = vadd.f32 %v1097_v56, %v207_v54  ;;  %v1099_v5 = vpop.f32.mrb[11].mxu0  ;;  %v2064_v7 = vpop.f32.mrb[11].mxu1  ;;  %v1186_v25 = vadd.f32 %v1168_v59, %v2933_v62 }
 0x61b   :  { %v1179_v11 = vadd.f32 %v1099_v5, %v208_v61  ;;  %v1520_v61 = vld [vmem:[#allocation2 + $0x1c8] sm:$0xff]  ;;  %v1522_v5 = vld [vmem:[#allocation2 + $0x1f8] sm:$0xff] }
 0x61c   :  { %v1703_v8 = vmul.f32 -1.442695, %v1172_v3  ;;  %v1521_v3 = vld [vmem:[#allocation2 + $0x1e0] sm:$0xff] }
 0x61d   :  { %v1704_v14 = vmul.f32 -1.442695, %v1179_v11  ;;  %v2602_v7 = vpack.c.bf16 %v1521_v3, %v1520_v61 }
 0x61e   :  { %2667 = vpow2.f32 %v1703_v8  ;;  %v1523_v8 = vld [vmem:[#allocation2 + $0x210] sm:$0xff] }
 0x61f   :  { %2669 = vpow2.f32 %v1704_v14  ;;  %v2605_v11 = vpack.c.bf16 %v1523_v8, %v1522_v5  ;;  %v1525_v14 = vld [vmem:[#allocation2 + $0x240] sm:$0xff] }
 0x628   :  { %v2668_v47 = vpop.eup %2667 }
 0x629   :  { %v1176_v17 = vadd.f32 1.0, %v2668_v47  ;;  %v2670_v19 = vpop.eup %2669  ;;  %v1526_v47 = vld [vmem:[#allocation2 + $0x258] sm:$0xff] }
 0x62a   :  { %v1183_v23 = vadd.f32 1.0, %v2670_v19 }
 0x62b   :  { %2671 = vrcp.f32 %v1176_v17  ;;  %v2608_v17 = vpack.c.bf16 %v1526_v47, %v1525_v14 }
 0x62c   :  { %2673 = vrcp.f32 %v1183_v23 }
 0x635   :  { %v2672_v26 = vpop.eup %2671 }
 0x636   :  { %v1187_v29 = vmul.f32 %v2672_v26, %v1186_v25  ;;  %v2674_v30 = vpop.eup %2673 }
 0x637   :  { %v1190_v40 = vsub.f32 1.0, %v2674_v30  ;;  %v1192_v45 = vmul.f32 %v2674_v30, %v3135_v51 }
 0x638   :  { %v1188_v39 = vadd.f32 %v1187_v29, %v209_v35 }
 0x63a   :  { %2675 = vtanh.f32 %v1188_v39 }
 0x644   :  { %v2676_v42 = vpop.eup %2675 }
 0x645   :  { %v1191_v43 = vmul.f32 %v2676_v42, %v1190_v40 }
 0x647   :  { %v3184_v49 = vadd.f32 %v1192_v45, %v1191_v43 }
 0x649   :  { %1259 = vmatmul.mubr.f32.vlgmr.msra.gmra.mrb[12].mxu0 %v3184_v49  ;;  %2098 = vmatmul.mubr.f32.vlgmr.msra.gmra.mrb[12].mxu1 %v3184_v49 }
 0x64a   :  { %2548 = vmatpush1.bf16.msra.mxu0 %v2786_v9  ;;  %2579 = vmatpush3.bf16.msra.mxu1 %v2805_v31  ;;  %v131_v9 = vsub.s32 7, %v2803_v28 }
 0x64b   :  { %2550 = vmatprep.subr.bf16.mxu0 %v2788_v10  ;;  %2580 = vmatprep.subr.bf16.mxu1 %v2749_v0  ;;  %v2697_v10 = vld [vmem:[%s3259_s0] sm:$0xff]  ;;  %s2752_s0 = smov [#allocation5]  }
 0x64c   :  { %1421 = vmatprep.mubr.f32.mxu0 %v2750_v1  ;;  %2132 = vmatprep.mubr.msk.f32.mxu1 %vm2751_vm0, %v2750_v1  ;;  %s1684_s26 = sshll.u32 %s2752_s0, 4  ;;  %s1685_s26 = int_to_ptr.vmem [resolvable:$true] %s1684_s26 }
 0x64d   :  { %s2720_s27 = scalar_lea.vmem %s1685_s26, 32  ;;  %p2725_p9 = scmp.lt.s32.totalorder %s1685_s26, %s1685_s26 }
 0x64e   :  { %2552 = vmatpush1.bf16.msra.mxu0 %v2792_v15  ;;  %2582 = vmatpush3.bf16.msra.mxu1 %v2811_v36  ;;  %v132_v15 = vrot.slane %v2697_v10, %v131_v9  ;;  %p2721_p8 = scmp.ne.s32.totalorder %s1685_s26, %s2720_s27  ;;  %p2726_p10 = scmp.lt.s32.totalorder %s2720_s27, %s2720_s27 }
 0x64f   :  { %2554 = vmatprep.subr.bf16.mxu0 %v2795_v16  ;;  %2583 = vmatprep.subr.bf16.mxu1 %v2749_v0  ;;  %v128_v16 = vpop.permute.xlu0 %127 }
 0x650   :  { %134 = vbcast.lane.b32.xlu1 %v132_v15, 256  ;;  %p2727_p11 = por %p2726_p10, %p2725_p9 }
 0x652   :  { %2556 = vmatpush1.bf16.msra.mxu0 %v2798_v22  ;;  %2585 = vmatpush3.bf16.msra.mxu1 %v2824_v46  ;;  %v170_v22 = vmul.f32 %v2917_v27, %v128_v16  ;;  %p2728_p12 = pnand %p2727_p11, %p2721_p8 }
 0x653   :  { %2558 = vmatprep.subr.bf16.mxu0 %v2801_v24  ;;  %2586 = vmatprep.subr.bf16.mxu1 %v2749_v0  ;;  %v171_v24 = vmul.f32 %v2919_v32, %v128_v16 }
 0x654   :  { %v210_v31 = vadd.f32 %v2922_v33, %v170_v22 }
 0x656   :  { %2560 = vmatpush1.bf16.msra.mxu0 %v2808_v34  ;;  %2588 = vmatpush3.bf16.msra.mxu1 %v2841_v57 }
 0x657   :  { %2562 = vmatprep.subr.bf16.mxu0 %v2814_v37  ;;  %2589 = vmatprep.subr.bf16.mxu1 %v2749_v0  ;;  %v211_v37 = vadd.f32 %v2925_v38, %v171_v24 }
 0x65a   :  { %2564 = vmatpush1.bf16.msra.mxu0 %v2821_v44  ;;  %2591 = vmatpush3.bf16.msra.mxu1 %v2851_v4 }
 0x65b   :  { %2566 = vmatprep.subr.bf16.mxu0 %v2832_v48  ;;  %2592 = vmatprep.subr.bf16.mxu1 %v2749_v0 }
 0x65e   :  { %2568 = vmatpush1.bf16.msra.mxu0 %v2838_v55  ;;  %2594 = vmatpush3.bf16.msra.mxu1 %v2861_v13 }
 0x65f   :  { %2570 = vmatprep.subr.bf16.mxu0 %v2844_v58  ;;  %2595 = vmatprep.subr.bf16.mxu1 %v2749_v0 }
 0x662   :  { %2572 = vmatpush1.bf16.msra.mxu0 %v2848_v2  ;;  %2597 = vmatpush3.bf16.msra.mxu1 %v2867_v18 }
 0x663   :  { %2574 = vmatprep.subr.bf16.mxu0 %v2854_v6  ;;  %2598 = vmatprep.subr.bf16.mxu1 %v2749_v0  ;;  %v172_v6 = vmul.f32 %v2931_v60, %v128_v16 }
 0x666   :  { %2576 = vmatpush1.bf16.msra.mxu0 %v2858_v12  ;;  %2600 = vmatpush3.bf16.msra.mxu1 %v2873_v21  ;;  %v212_v21 = vadd.f32 %v2935_v63, %v172_v6 }
 0x667   :  { %2601 = vmatprep.subr.bf16.mxu0 %v2749_v0  ;;  %2607 = vmatprep.subr.bf16.mxu1 %v2749_v0 }
 0x6c2   :  { %v135_v19 = vpop.permute.xlu1 %134 }
 0x6c3   :  { %v173_v20 = vmul.f32 %v2917_v27, %v135_v19  ;;  %v174_v23 = vmul.f32 %v2919_v32, %v135_v19  ;;  %v175_v32 = vmul.f32 %v2931_v60, %v135_v19 }
 0x6c5   :  { %v214_v35 = vadd.f32 %v2925_v38, %v174_v23  ;;  %v215_v38 = vadd.f32 %v2935_v63, %v175_v32 }
 0x71c   :  { %v1260_v34 = vpop.f32.mrb[12].mxu0  ;;  %v1331_v36 = vpop.f32.mrb[12].mxu1 }
 0x71d   :  { %v1335_v44 = vadd.f32 %v1260_v34, %v210_v31  ;;  %v1262_v46 = vpop.f32.mrb[13].mxu0  ;;  %v2099_v28 = vpop.f32.mrb[13].mxu1  ;;  %v1349_v13 = vadd.f32 %v1331_v36, %v2933_v62 }
 0x71e   :  { %v1342_v55 = vadd.f32 %v1262_v46, %v211_v37  ;;  %v1524_v37 = vld [vmem:[#allocation2 + $0x228] ss:$0 sm:$0xff]  ;;  %v1527_v46 = vld [vmem:[#allocation2 + $0x270] ss:$0 sm:$0xff] }
 0x71f   :  { %v1705_v48 = vmul.f32 -1.442695, %v1335_v44 }
 0x720   :  { %v1706_v57 = vmul.f32 -1.442695, %v1342_v55 }
 0x721   :  { %2677 = vpow2.f32 %v1705_v48 }
 0x722   :  { %2679 = vpow2.f32 %v1706_v57 }
 0x72b   :  { %v2678_v58 = vpop.eup %2677 }
 0x72c   :  { %v1339_v2 = vadd.f32 1.0, %v2678_v58  ;;  %v2680_v4 = vpop.eup %2679 }
 0x72d   :  { %v1346_v12 = vadd.f32 1.0, %v2680_v4 }
 0x72e   :  { %2681 = vrcp.f32 %v1339_v2 }
 0x72f   :  { %2683 = vrcp.f32 %v1346_v12 }
 0x738   :  { %v2682_v18 = vpop.eup %2681 }
 0x739   :  { %v1350_v51 = vmul.f32 %v2682_v18, %v1349_v13  ;;  %v2684_v52 = vpop.eup %2683 }
 0x73a   :  { %v1353_v53 = vsub.f32 1.0, %v2684_v52  ;;  %v1355_v56 = vmul.f32 %v2684_v52, %v3184_v49 }
 0x73b   :  { %v1351_v50 = vadd.f32 %v1350_v51, %v212_v21 }
 0x73d   :  { %2685 = vtanh.f32 %v1351_v50 }
 0x747   :  { %v2686_v41 = vpop.eup %2685 }
 0x748   :  { %v1354_v54 = vmul.f32 %v2686_v41, %v1353_v53 }
 0x74a   :  { %v1356_v59 = vadd.f32 %v1355_v56, %v1354_v54 }
 0x74c   :  { %1422 = vmatmul.mubr.f32.vlgmr.msra.gmra.mrb[14].mxu0 %v1356_v59  ;;  %2133 = vmatmul.mubr.f32.vlgmr.msra.gmra.mrb[14].mxu1 %v1356_v59 }
 0x74d   :  { %2143 = vmatprep.mubr.msk.f32.mxu0 %vm2751_vm0, %v2750_v1  ;;  %2150 = vmatprep.mubr.msk.f32.mxu1 %vm2751_vm0, %v2750_v1  ;;  %v213_v1 = vadd.f32 %v2922_v33, %v173_v20 }
 0x74e   :  { %2603 = vmatpush3.bf16.msra.mxu0 %v2602_v7  ;;  %2609 = vmatpush3.bf16.msra.mxu1 %v2608_v17 }
 0x74f   :  { %2604 = vmatprep.subr.bf16.mxu0 %v2749_v0 }
 0x752   :  { %2606 = vmatpush3.bf16.msra.mxu0 %v2605_v11 }
 0x81f   :  { %v1423_v25 = vpop.f32.mrb[14].mxu0  ;;  %v1494_v26 = vpop.f32.mrb[14].mxu1 }
 0x820   :  { %v1498_v29 = vadd.f32 %v1423_v25, %v213_v1  ;;  %v1425_v39 = vpop.f32.mrb[15].mxu0  ;;  %v2134_v30 = vpop.f32.mrb[15].mxu1  ;;  %v1512_v33 = vadd.f32 %v1494_v26, %v2933_v62 }
 0x821   :  { %v1505_v40 = vadd.f32 %v1425_v39, %v214_v35 }
 0x822   :  { %v1707_v0 = vmul.f32 -1.442695, %v1498_v29 }
 0x823   :  { %v1708_v42 = vmul.f32 -1.442695, %v1505_v40 }
 0x824   :  { %2687 = vpow2.f32 %v1707_v0 }
 0x825   :  { %2689 = vpow2.f32 %v1708_v42 }
 0x82e   :  { %v2688_v43 = vpop.eup %2687 }
 0x82f   :  { %v1502_v45 = vadd.f32 1.0, %v2688_v43  ;;  %v2690_v27 = vpop.eup %2689 }
 0x830   :  { %v1509_v49 = vadd.f32 1.0, %v2690_v27 }
 0x831   :  { %2691 = vrcp.f32 %v1502_v45 }
 0x832   :  { %2693 = vrcp.f32 %v1509_v49 }
 0x83b   :  { %v2692_v9 = vpop.eup %2691 }
 0x83c   :  { %v1513_v10 = vmul.f32 %v2692_v9, %v1512_v33  ;;  %v2694_v16 = vpop.eup %2693 }
 0x83d   :  { %v1516_v22 = vsub.f32 1.0, %v2694_v16  ;;  %v1518_v34 = vmul.f32 %v2694_v16, %v1356_v59 }
 0x83e   :  { %v1514_v15 = vadd.f32 %v1513_v10, %v215_v38 }
 0x840   :  { %2695 = vtanh.f32 %v1514_v15 }
 0x84a   :  { %v2696_v24 = vpop.eup %2695 }
 0x84b   :  { %v1517_v31 = vmul.f32 %v2696_v24, %v1516_v22 }
 0x84d   :  { %v1519_v36 = vadd.f32 %v1518_v34, %v1517_v31 }
 0x84f   :  { %2144 = vmatmul.mubr.msk.f32.vlgmr.msra.gmra.mrb[16].mxu0 %vm1528_vm1, %v1519_v36 }
 0x922   :  { %v1598_v60 = vpop.f32.mrb[16].mxu0 }
 0x923   :  { %v1599_v44 = vadd.f32 %v1598_v60, %v1524_v37  ;;  %v2145_v62 = vpop.f32.mrb[17].mxu0 }
 0x925   :  { %2151 = vmatmul.mubr.msk.f32.vlgmr.msra.gmra.mrb[16].mxu1 %vm1602_vm2, %v1599_v44 }
 0x9f8   :  { %v1672_v63 = vpop.f32.mrb[16].mxu1 }
 0x9f9   :  { %v1673_v28 = vadd.f32 %v1672_v63, %v1527_v46  ;;  %v2152_v48 = vpop.f32.mrb[17].mxu1 }
 0x9fb   :  { %1677 = vst.msk [vmem:[#allocation5] sm:$0x3] %vm1676_vm3, %v1673_v28 }
 0x9fc   :  { %2731 = shalt.err (!%p2728_p12)
}
 0x9fd   :  { %s2732_s30 = scalar_lea.hbm %s3261_s2, 32 }
 0x9fe   :  { %p2733_p13 = scmp.ne.s32.totalorder %s3261_s2, %s2732_s30  ;;  %p2736_p0 = scmp.lt.u32.totalorder %s2732_s30, %s3261_s2 }
 0xa00   :  { %p2738_p1 = pnand %p2736_p0, %p2733_p13 }
 0xa02   :  { %2741 = shalt.err (!%p2738_p1)
}
 0xa03   :  { %1687 = dma.vmem_to_hbm [thread:$0]  %s1685_s26, 32, %s3261_s2, [#allocation4]  }
 0xa04   :  { %2744 = dma.done.wait [#allocation4], 32  }
 0xa05   :  { %2745 = vsyncadd [#allocation4], 4294967264 }
 0xa06   :  { %1691 = vsyncpa [#allocation3], 1 }
 0xa07   :  { %1692 = vsyncpa [#allocation4], 1 }

</bundles_post_ra>
